<compile_context>
chip_gen: v5e
topology: v5e:2x2
jax: 0.10.0
libtpu: 0.0.40
codegen_flags: <defaults>
</compile_context>

<pallas_src>
import jax
import jax.numpy as jnp
from jax.experimental import pallas as pl
from jax.experimental.pallas import tpu as pltpu

LEAKY_SLOPE = 0.1
BN_EPS = 1e-5


def _round_up(x, m):
    return (x + m - 1) // m * m


def _pick_hidden_tile(chid, max_tile=512):
    """Largest multiple of 128 (<= max_tile) dividing chid, else chid itself."""
    for t in (512, 384, 256, 128):
        if t <= max_tile and chid % t == 0:
            return t
    # Falls back to a full-dim block (legal, but disables hidden streaming).
    return chid


def _pick_m_tile(n_rows, wp, w, ck, coutp, tc, max_tile_bytes=8 * 2**20):
    """Rows-per-tile so the per-step VMEM working set stays ~max_tile_bytes."""
    per_row = (2 * wp * ck * 2          # x tile, double-buffered, bf16
               + 2 * w * coutp * 4      # resident f32 output block (+wb buf)
               + w * tc * 4             # hidden activation h, f32
               + w * coutp * 4)         # 1x1 partial, f32
    tm = max(8, max_tile_bytes // per_row)
    return int(min(tm, max(n_rows, 8)))


# ----------------------------------------------------------------------------
# Fused kernel: [3x3 conv (kh folded, per-kw-tap matmuls) + folded-BN affine +
# LeakyReLU] -> [1x1 conv + bias], accumulated over hidden-channel chunks.
# Grid: (M-tile i  [parallel], hidden-chunk j [arbitrary, last/reduction]).
# ----------------------------------------------------------------------------
def _cblconv_kernel(x_ref, w1_ref, s1_ref, b1_ref, w2_ref, b2_ref, o_ref):
    # x_ref : (TM, Wp, CK)   bf16  TM output rows, Wp = W + kw - 1, CK = kh*Cin
    # w1_ref: (kw, CK, Tc)   bf16  per-kw-tap 3x3 weights for this hidden chunk
    # s1_ref: (1, Tc)        f32   folded BN scale
    # b1_ref: (1, Tc)        f32   folded BN bias
    # w2_ref: (Tc, Coutp)    bf16  1x1 weight rows for this hidden chunk
    # b2_ref: (1, Coutp)     f32   1x1 conv bias (lane-padded)
    # o_ref : (TM*W, Coutp)  f32   output block, VMEM-resident across j
    j = pl.program_id(1)
    tm, wp, ck = x_ref.shape
    n_taps = w1_ref.shape[0]
    w = wp - (n_taps - 1)

    # 3x3 conv for this hidden-channel chunk: one MXU matmul per kw tap
    # (kh already folded into CK), f32 accumulation.
    h = jnp.dot(x_ref[:, 0:w, :].reshape(tm * w, ck), w1_ref[0],
                preferred_element_type=jnp.float32)
    for kx in range(1, n_taps):
        h = h + jnp.dot(x_ref[:, kx:kx + w, :].reshape(tm * w, ck),
                        w1_ref[kx], preferred_element_type=jnp.float32)

    # Folded BatchNorm (eval-mode running stats) + LeakyReLU(0.1) in f32.
    h = h * s1_ref[0] + b1_ref[0]
    h = jnp.maximum(h, LEAKY_SLOPE * h)

    # Partial 1x1 conv contribution (bf16 MXU, f32 accumulate directly into
    # the output block; bias pre-loaded at the first hidden chunk).
    part = jnp.dot(h.astype(jnp.bfloat16), w2_ref[...],
                   preferred_element_type=jnp.float32)

    @pl.when(j == 0)
    def _():
        o_ref[...] = part + b2_ref[0]

    @pl.when(j != 0)
    def _():
        o_ref[...] = o_ref[...] + part


# ----------------------------------------------------------------------------
# One-time weight preparation (bf16 cast, kw-tap layout, Cout lane padding).
# ----------------------------------------------------------------------------
def prepare_cblconv(params):
    w1 = params["w1"]                              # (kh, kw, Cin, Chid) HWIO
    kh, kw, cin, chid = w1.shape
    cout = params["w2"].shape[1]
    coutp = _round_up(cout, 128)

    # Per-kw-tap matrices contracting the kh-stacked channel axis [kh, Cin].
    w1t = jnp.transpose(w1, (1, 0, 2, 3)).reshape(kw, kh * cin, chid)
    w1t = w1t.astype(jnp.bfloat16)

    s1 = params["scale1"].reshape(1, chid).astype(jnp.float32)
    b1 = params["bias1"].reshape(1, chid).astype(jnp.float32)

    w2p = jnp.zeros((chid, coutp), jnp.bfloat16)
    w2p = w2p.at[:, :cout].set(params["w2"].astype(jnp.bfloat16))
    b2p = jnp.zeros((1, coutp), jnp.float32)
    b2p = b2p.at[0, :cout].set(params["bias2"].astype(jnp.float32))

    return dict(w1t=w1t, s1=s1, b1=b1, w2p=w2p, b2p=b2p,
                kh=kh, kw=kw, cin=cin, chid=chid, cout=cout, coutp=coutp)


# ----------------------------------------------------------------------------
# Forward: NCHW in -> NCHW out (PyTorch semantics, 'same' 3x3 then 1x1+bias).
# ----------------------------------------------------------------------------
def cblconv_forward(prepared, x_nchw, *, m_tile_rows=None, max_hidden_tile=512):
    kh, kw = prepared["kh"], prepared["kw"]
    cin, chid = prepared["cin"], prepared["chid"]
    cout, coutp = prepared["cout"], prepared["coutp"]

    N, Cin, H, W = x_nchw.shape
    assert Cin == cin, (Cin, cin)
    ph, pw = kh // 2, kw // 2
    CK = kh * cin
    Wp = W + 2 * pw

    # NCHW -> NHWC bf16, 'same' pad once, fold only the kh taps into the
    # channel axis (3x activation inflation instead of 9x full im2col).  The
    # kw taps are handled inside the kernel on the resident VMEM tile.
    x = jnp.transpose(x_nchw, (0, 2, 3, 1)).astype(jnp.bfloat16)
    xp = jnp.pad(x, ((0, 0), (ph, ph), (pw, pw), (0, 0)))
    x_kh = jnp.concatenate([xp[:, ky:ky + H, :, :] for ky in range(kh)],
                           axis=-1)                      # (N, H, Wp, CK)
    n_rows = N * H
    x_kh = x_kh.reshape(n_rows, Wp, CK)

    Tc = _pick_hidden_tile(chid, max_hidden_tile)
    n_steps = chid // Tc

    TM = int(m_tile_rows) if m_tile_rows else _pick_m_tile(
        n_rows, Wp, W, CK, coutp, Tc)
    if (TM * W) % 8 != 0:                 # keep the flat output sublane-aligned
        TM = _round_up(TM, 8)
    Mp = _round_up(n_rows, TM)
    if Mp != n_rows:
        x_kh = jnp.pad(x_kh, ((0, Mp - n_rows), (0, 0), (0, 0)))
    n_m_tiles = Mp // TM

    flops = 2 * Mp * W * (kh * kw * cin) * chid + 2 * Mp * W * chid * coutp
    bytes_accessed = (x_kh.size * 2
                      + (prepared["w1t"].size + prepared["w2p"].size) * 2 * n_m_tiles
                      + Mp * W * coutp * 4)
    vmem_est = (2 * TM * Wp * CK * 2                       # x tile (x2 bufs)
                + 2 * (kw * CK * Tc + Tc * coutp) * 2      # weight chunks (x2)
                + 2 * TM * W * coutp * 4                   # output block (+wb)
                + TM * W * (Tc + coutp) * 4)               # h / partial, f32
    vmem_limit = int(min(64 * 2**20, max(32 * 2**20, 2 * vmem_est)))

    out_pad = pl.pallas_call(
        _cblconv_kernel,
        out_shape=jax.ShapeDtypeStruct((Mp * W, coutp), jnp.float32),
        grid_spec=pltpu.PrefetchScalarGridSpec(
            num_scalar_prefetch=0,
            grid=(n_m_tiles, n_steps),        # hidden-chunk reduction axis LAST
            in_specs=[
                pl.BlockSpec((TM, Wp, CK), lambda i, j: (i, 0, 0)),   # activ.
                pl.BlockSpec((kw, CK, Tc), lambda i, j: (0, 0, j)),   # 3x3 w
                pl.BlockSpec((1, Tc), lambda i, j: (0, j)),           # BN scale
                pl.BlockSpec((1, Tc), lambda i, j: (0, j)),           # BN bias
                pl.BlockSpec((Tc, coutp), lambda i, j: (j, 0)),       # 1x1 w
                pl.BlockSpec((1, coutp), lambda i, j: (0, 0)),        # 1x1 bias
            ],
            out_specs=pl.BlockSpec((TM * W, coutp), lambda i, j: (i, 0)),
        ),
        compiler_params=pltpu.CompilerParams(
            # M-tiles are independent -> "parallel" (2 TCs on v7x);
            # hidden-chunk axis is the accumulation/reduction -> "arbitrary".
            dimension_semantics=("parallel", "arbitrary"),
            vmem_limit_bytes=vmem_limit,
        ),
        cost_estimate=pl.CostEstimate(flops=flops, transcendentals=0,
                                      bytes_accessed=bytes_accessed),
    )(x_kh, prepared["w1t"], prepared["s1"], prepared["b1"],
      prepared["w2p"], prepared["b2p"])

    out = out_pad[:n_rows * W, :cout].reshape(N, H, W, cout)
    return jnp.transpose(out, (0, 3, 1, 2))


# ----------------------------------------------------------------------------
# Parameters (mirrors PyTorch CBLConv.__init__ shapes, BN folded for eval mode)
# ----------------------------------------------------------------------------
def init_cblconv(key, cin, chid, cout, wscale=0.05):
    ks = jax.random.split(key, 7)
    w1 = wscale * jax.random.normal(ks[0], (3, 3, cin, chid), jnp.float32)
    gamma = 1.0 + 0.1 * jax.random.normal(ks[1], (chid,), jnp.float32)
    beta = 0.1 * jax.random.normal(ks[2], (chid,), jnp.float32)
    running_mean = 0.1 * jax.random.normal(ks[3], (chid,), jnp.float32)
    running_var = 1.0 + jnp.abs(
        0.1 * jax.random.normal(ks[4], (chid,), jnp.float32))
    # TODO(synk): BatchNorm folded with eval-mode running statistics;
    #             training-mode batch statistics are not reproduced.
    scale1 = gamma / jnp.sqrt(running_var + BN_EPS)
    bias1 = beta - running_mean * scale1
    w2 = wscale * jax.random.normal(ks[5], (chid, cout), jnp.float32)
    bias2 = 0.1 * jax.random.normal(ks[6], (cout,), jnp.float32)
    return {"w1": w1, "scale1": scale1, "bias1": bias1,
            "w2": w2, "bias2": bias2}


# ----------------------------------------------------------------------------
# Pure-JAX reference with the same bf16-on-MXU numerics as the kernel
# ----------------------------------------------------------------------------
def cblconv_reference(params, x_nchw):
    w1 = params["w1"].astype(jnp.bfloat16)
    w2 = params["w2"].astype(jnp.bfloat16)
    s1 = params["scale1"].astype(jnp.float32)
    b1 = params["bias1"].astype(jnp.float32)
    b2 = params["bias2"].astype(jnp.float32)

    N, Cin, H, W = x_nchw.shape
    kh, kw = w1.shape[0], w1.shape[1]
    ph, pw = kh // 2, kw // 2
    x = jnp.transpose(x_nchw, (0, 2, 3, 1)).astype(jnp.bfloat16)
    xp = jnp.pad(x, ((0, 0), (ph, ph), (pw, pw), (0, 0)))
    h = jnp.zeros((N, H, W, w1.shape[3]), jnp.float32)
    for ky in range(kh):
        for kx in range(kw):
            patch = xp[:, ky:ky + H, kx:kx + W, :]
            h = h + jnp.einsum("nhwc,cd->nhwd", patch, w1[ky, kx],
                               preferred_element_type=jnp.float32)
    h = h * s1 + b1
    h = jnp.maximum(h, LEAKY_SLOPE * h)
    y = jnp.einsum("nhwc,cd->nhwd", h.astype(jnp.bfloat16), w2,
                   preferred_element_type=jnp.float32) + b2
    return jnp.transpose(y, (0, 3, 1, 2))


# ----------------------------------------------------------------------------
if __name__ == "__main__":
    key = jax.random.PRNGKey(0)
    k_x, k_p = jax.random.split(key)

    # Small shapes consistent with the module (CBLConv(Cin, Chid, Cout)).
    N, Cin, Chid, Cout, H, W = 2, 32, 256, 18, 16, 16
    x = jax.random.normal(k_x, (N, Cin, H, W), jnp.float32)
    params = init_cblconv(k_p, Cin, Chid, Cout)
    prepared = prepare_cblconv(params)

    # Small tiles so the test exercises BOTH grid axes:
    # 2 M-tiles (parallel) x 2 hidden chunks (reduction / revisited output).
    out = cblconv_forward(prepared, x, m_tile_rows=16, max_hidden_tile=128)
    jax.block_until_ready(out)

    assert out.shape == (N, Cout, H, W), out.shape
    assert out.dtype == jnp.float32, out.dtype

    ref = cblconv_reference(params, x)
    err = float(jnp.max(jnp.abs(out - ref)))
    assert err < 5e-2, f"max abs error vs reference: {err}"

    print("KERNEL_OK")
</pallas_src>

<mosaic_0001>
module attributes {stable_mosaic.version = 11 : i64} {
  func.func @_cblconv_kernel(%arg0: i32, %arg1: i32, %arg2: memref<16x18x96xbf16, #tpu.memory_space<vmem>>, %arg3: memref<3x96x128xbf16, #tpu.memory_space<vmem>>, %arg4: memref<1x128xf32, #tpu.memory_space<vmem>>, %arg5: memref<1x128xf32, #tpu.memory_space<vmem>>, %arg6: memref<128x128xbf16, #tpu.memory_space<vmem>>, %arg7: memref<1x128xf32, #tpu.memory_space<vmem>>, %arg8: memref<256x128xf32, #tpu.memory_space<vmem>>) attributes {dimension_semantics = [#tpu.dimension_semantics<parallel>, #tpu.dimension_semantics<arbitrary>], iteration_bounds = array<i64: 2, 2>, scalar_prefetch = 0 : i64, scratch_operands = 0 : i64, tpu.core_type = #tpu.core_type<tc>, window_params = [{transform_indices = @transform_0, window_bounds = array<i64: 16, 18, 96>}, {transform_indices = @transform_1, window_bounds = array<i64: 3, 96, 128>}, {transform_indices = @transform_2, window_bounds = array<i64: 1, 128>}, {transform_indices = @transform_3, window_bounds = array<i64: 1, 128>}, {transform_indices = @transform_4, window_bounds = array<i64: 128, 128>}, {pipeline_mode = #tpu.pipeline_mode<synchronous>, transform_indices = @transform_5, window_bounds = array<i64: 1, 128>}, {transform_indices = @transform_6, window_bounds = array<i64: 256, 128>}]} {
    %c0 = arith.constant 0 : index
    %c0_0 = arith.constant 0 : index
    %c0_1 = arith.constant 0 : index
    %0 = vector.load %arg2[%c0, %c0_0, %c0_1] : memref<16x18x96xbf16, #tpu.memory_space<vmem>>, vector<16x16x96xbf16>
    %1 = vector.shape_cast %0 : vector<16x16x96xbf16> to vector<256x96xbf16>
    %c0_2 = arith.constant 0 : index
    %c0_3 = arith.constant 0 : index
    %c0_4 = arith.constant 0 : index
    %2 = vector.load %arg3[%c0_2, %c0_3, %c0_4] : memref<3x96x128xbf16, #tpu.memory_space<vmem>>, vector<1x96x128xbf16>
    %3 = vector.shape_cast %2 : vector<1x96x128xbf16> to vector<96x128xbf16>
    %cst = arith.constant dense<0.000000e+00> : vector<256x128xf32>
    %4 = tpu.matmul %1, %3, %cst {dimension_numbers = #tpu.dot_dimension_numbers<[1], [0], [0], [1], [0, 0, 1, 1], [], []>} : vector<256x96xbf16>, vector<96x128xbf16>, vector<256x128xf32> -> vector<256x128xf32>
    %c0_5 = arith.constant 0 : index
    %c1 = arith.constant 1 : index
    %c0_6 = arith.constant 0 : index
    %5 = vector.load %arg2[%c0_5, %c1, %c0_6] : memref<16x18x96xbf16, #tpu.memory_space<vmem>>, vector<16x16x96xbf16>
    %6 = vector.shape_cast %5 : vector<16x16x96xbf16> to vector<256x96xbf16>
    %c1_7 = arith.constant 1 : index
    %c0_8 = arith.constant 0 : index
    %c0_9 = arith.constant 0 : index
    %7 = vector.load %arg3[%c1_7, %c0_8, %c0_9] : memref<3x96x128xbf16, #tpu.memory_space<vmem>>, vector<1x96x128xbf16>
    %8 = vector.shape_cast %7 : vector<1x96x128xbf16> to vector<96x128xbf16>
    %cst_10 = arith.constant dense<0.000000e+00> : vector<256x128xf32>
    %9 = tpu.matmul %6, %8, %cst_10 {dimension_numbers = #tpu.dot_dimension_numbers<[1], [0], [0], [1], [0, 0, 1, 1], [], []>} : vector<256x96xbf16>, vector<96x128xbf16>, vector<256x128xf32> -> vector<256x128xf32>
    %10 = arith.addf %4, %9 : vector<256x128xf32>
    %c0_11 = arith.constant 0 : index
    %c2 = arith.constant 2 : index
    %c0_12 = arith.constant 0 : index
    %11 = vector.load %arg2[%c0_11, %c2, %c0_12] : memref<16x18x96xbf16, #tpu.memory_space<vmem>>, vector<16x16x96xbf16>
    %12 = vector.shape_cast %11 : vector<16x16x96xbf16> to vector<256x96xbf16>
    %c2_13 = arith.constant 2 : index
    %c0_14 = arith.constant 0 : index
    %c0_15 = arith.constant 0 : index
    %13 = vector.load %arg3[%c2_13, %c0_14, %c0_15] : memref<3x96x128xbf16, #tpu.memory_space<vmem>>, vector<1x96x128xbf16>
    %14 = vector.shape_cast %13 : vector<1x96x128xbf16> to vector<96x128xbf16>
    %cst_16 = arith.constant dense<0.000000e+00> : vector<256x128xf32>
    %15 = tpu.matmul %12, %14, %cst_16 {dimension_numbers = #tpu.dot_dimension_numbers<[1], [0], [0], [1], [0, 0, 1, 1], [], []>} : vector<256x96xbf16>, vector<96x128xbf16>, vector<256x128xf32> -> vector<256x128xf32>
    %16 = arith.addf %10, %15 : vector<256x128xf32>
    %c0_17 = arith.constant 0 : index
    %c0_18 = arith.constant 0 : index
    %17 = vector.load %arg4[%c0_17, %c0_18] : memref<1x128xf32, #tpu.memory_space<vmem>>, vector<1x128xf32>
    %18 = vector.shape_cast %17 : vector<1x128xf32> to vector<128xf32>
    %19 = vector.shape_cast %18 : vector<128xf32> to vector<1x128xf32>
    %20 = vector.broadcast %19 : vector<1x128xf32> to vector<256x128xf32>
    %21 = arith.mulf %16, %20 : vector<256x128xf32>
    %c0_19 = arith.constant 0 : index
    %c0_20 = arith.constant 0 : index
    %22 = vector.load %arg5[%c0_19, %c0_20] : memref<1x128xf32, #tpu.memory_space<vmem>>, vector<1x128xf32>
    %23 = vector.shape_cast %22 : vector<1x128xf32> to vector<128xf32>
    %24 = vector.shape_cast %23 : vector<128xf32> to vector<1x128xf32>
    %25 = vector.broadcast %24 : vector<1x128xf32> to vector<256x128xf32>
    %26 = arith.addf %21, %25 : vector<256x128xf32>
    %cst_21 = arith.constant 1.000000e-01 : f32
    %27 = vector.broadcast %cst_21 : f32 to vector<256x128xf32>
    %28 = arith.mulf %27, %26 : vector<256x128xf32>
    %29 = arith.maximumf %26, %28 : vector<256x128xf32>
    %30 = arith.truncf %29 : vector<256x128xf32> to vector<256x128xbf16>
    %c0_22 = arith.constant 0 : index
    %c0_23 = arith.constant 0 : index
    %31 = vector.load %arg6[%c0_22, %c0_23] : memref<128x128xbf16, #tpu.memory_space<vmem>>, vector<128x128xbf16>
    %cst_24 = arith.constant dense<0.000000e+00> : vector<256x128xf32>
    %32 = tpu.matmul %30, %31, %cst_24 {dimension_numbers = #tpu.dot_dimension_numbers<[1], [0], [0], [1], [0, 0, 1, 1], [], []>} : vector<256x128xbf16>, vector<128x128xbf16>, vector<256x128xf32> -> vector<256x128xf32>
    %c0_i32 = arith.constant 0 : i32
    %33 = arith.cmpi eq, %arg1, %c0_i32 : i32
    %34 = arith.extui %33 : i1 to i32
    %c0_i32_25 = arith.constant 0 : i32
    %35 = arith.cmpi ne, %34, %c0_i32_25 : i32
    scf.if %35 {
      %c0_28 = arith.constant 0 : index
      %c0_29 = arith.constant 0 : index
      %39 = vector.load %arg7[%c0_28, %c0_29] : memref<1x128xf32, #tpu.memory_space<vmem>>, vector<1x128xf32>
      %40 = vector.shape_cast %39 : vector<1x128xf32> to vector<128xf32>
      %41 = vector.shape_cast %40 : vector<128xf32> to vector<1x128xf32>
      %42 = vector.broadcast %41 : vector<1x128xf32> to vector<256x128xf32>
      %43 = arith.addf %32, %42 : vector<256x128xf32>
      %c0_30 = arith.constant 0 : index
      %c0_31 = arith.constant 0 : index
      %44 = vector.load %arg8[%c0_30, %c0_31] : memref<256x128xf32, #tpu.memory_space<vmem>>, vector<256x128xf32>
      tpu.vector_store %arg8[%c0_30, %c0_31], %43 {strides = array<i32>} : memref<256x128xf32, #tpu.memory_space<vmem>>, vector<256x128xf32>,
    } else {
    }
    %c0_i32_26 = arith.constant 0 : i32
    %36 = arith.cmpi ne, %arg1, %c0_i32_26 : i32
    %37 = arith.extui %36 : i1 to i32
    %c0_i32_27 = arith.constant 0 : i32
    %38 = arith.cmpi ne, %37, %c0_i32_27 : i32
    scf.if %38 {
      %c0_28 = arith.constant 0 : index
      %c0_29 = arith.constant 0 : index
      %39 = vector.load %arg8[%c0_28, %c0_29] : memref<256x128xf32, #tpu.memory_space<vmem>>, vector<256x128xf32>
      %40 = arith.addf %39, %32 : vector<256x128xf32>
      %c0_30 = arith.constant 0 : index
      %c0_31 = arith.constant 0 : index
      %41 = vector.load %arg8[%c0_30, %c0_31] : memref<256x128xf32, #tpu.memory_space<vmem>>, vector<256x128xf32>
      tpu.vector_store %arg8[%c0_30, %c0_31], %40 {strides = array<i32>} : memref<256x128xf32, #tpu.memory_space<vmem>>, vector<256x128xf32>,
    } else {
    }
    return
  }
  func.func @transform_0(%arg0: i32, %arg1: i32) -> (i32, i32, i32) {
    %c0_i32 = arith.constant 0 : i32
    %c0_i32_0 = arith.constant 0 : i32
    %c0_i32_1 = arith.constant 0 : i32
    return %arg0, %c0_i32, %c0_i32_0 : i32, i32, i32
  }
  func.func @transform_1(%arg0: i32, %arg1: i32) -> (i32, i32, i32) {
    %c0_i32 = arith.constant 0 : i32
    %c0_i32_0 = arith.constant 0 : i32
    %c0_i32_1 = arith.constant 0 : i32
    return %c0_i32, %c0_i32_0, %arg1 : i32, i32, i32
  }
  func.func @transform_2(%arg0: i32, %arg1: i32) -> (i32, i32) {
    %c0_i32 = arith.constant 0 : i32
    %c0_i32_0 = arith.constant 0 : i32
    return %c0_i32, %arg1 : i32, i32
  }
  func.func @transform_3(%arg0: i32, %arg1: i32) -> (i32, i32) {
    %c0_i32 = arith.constant 0 : i32
    %c0_i32_0 = arith.constant 0 : i32
    return %c0_i32, %arg1 : i32, i32
  }
  func.func @transform_4(%arg0: i32, %arg1: i32) -> (i32, i32) {
    %c0_i32 = arith.constant 0 : i32
    %c0_i32_0 = arith.constant 0 : i32
    return %arg1, %c0_i32 : i32, i32
  }
  func.func @transform_5(%arg0: i32, %arg1: i32) -> (i32, i32) {
    %c0_i32 = arith.constant 0 : i32
    %c0_i32_0 = arith.constant 0 : i32
    %c0_i32_1 = arith.constant 0 : i32
    return %c0_i32, %c0_i32_0 : i32, i32
  }
  func.func @transform_6(%arg0: i32, %arg1: i32) -> (i32, i32) {
    %c0_i32 = arith.constant 0 : i32
    %c0_i32_0 = arith.constant 0 : i32
    return %arg0, %c0_i32 : i32, i32
  }
}

</mosaic_0001>

<bundles_post_ra>
// kernel: tpu_custom_call.1
= control target key start
LH: loop header
LB: loop body
LE: loop exit
PB: predicated region body
PF: predicated region fallthrough
CT: control target
= control target key end

     0   :  { %s3948_s0 = inlined_call_operand.vmem [shape: bf16[32,18,96], index: 0, kind: input, shape index: {}]   ;;  %s3949_s1 = inlined_call_operand.vmem [shape: bf16[3,96,256], index: 1, kind: input, shape index: {}]   ;;  %s3950_s2 = inlined_call_operand.vmem [shape: f32[1,256], index: 2, kind: input, shape index: {}]   ;;  %s3951_s3 = inlined_call_operand.vmem [shape: f32[1,256], index: 3, kind: input, shape index: {}]   ;;  %s3952_s4 = inlined_call_operand.vmem [shape: bf16[256,128], index: 4, kind: input, shape index: {}]   ;;  %s3953_s5 = inlined_call_operand.vmem [shape: f32[1,128], index: 5, kind: input, shape index: {}]   ;;  %s3954_s6 = inlined_call_operand.hbm [shape: f32[512,128], index: 6, kind: output, shape index: {}]  }
   0x1   :  { %3956 = sst [smem:[#allocation6_spill]] %s3948_s0 }
   0x2   :  { %3957 = sst [smem:[#allocation7_spill]] %s3949_s1 }
   0x3   :  { %3958 = sst [smem:[#allocation8_spill]] %s3950_s2 }
   0x4   :  { %3959 = sst [smem:[#allocation9_spill]] %s3951_s3 }
   0x5   :  { %11 = vsyncpa [#allocation4], 0 }
   0x6   :  { %13 = vsyncpa [#allocation4 + $0x1], 0  ;;  %s3063_s21 = smov 0   ;;  %s3065_s22 = smov 0  }
   0x7   :  { %s3067_s23 = smov 0   ;;  %s3069_s24 = smov 0  }
   0x8   :  { %s3071_s25 = smov 0   ;;  %s3073_s26 = smov 0  }
   0x9   :  { %s3075_s27 = smov 0   ;;  %s3077_s28 = smov 0  }
   0xa   :  { %s3079_s29 = smov 0   ;;  %s3081_s30 = smov 0  }
   0xb LB: > { %s2500_s7 = sadd.s32 4294967295, %s3024_s30   ;;  %s2501_s8 = sadd.s32 4294967294, %s3024_s30   ;;  %s3024_s30 = sphi %s3081_s30, %s19_s30   ;;  %s3020_s29 = sphi %s3079_s29, %s3980_s29   ;;  %s3016_s28 = sphi %s3077_s28, %s3979_s28   ;;  %s3012_s27 = sphi %s3075_s27, %s3978_s27   ;;  %s3008_s26 = sphi %s3073_s26, %s3977_s26   ;;  %s3004_s25 = sphi %s3071_s25, %s3976_s25   ;;  %s3000_s24 = sphi %s3069_s24, %s3975_s24   ;;  %s2996_s23 = sphi %s3067_s23, %s3974_s23   ;;  %s2992_s22 = sphi %s3065_s22, %s3973_s22   ;;  %s2988_s21 = sphi %s3063_s21, %s3972_s21  }
   0xc   : > { %s28_s9 = sadd.s32 1, %s3016_s28  ;;  %s31_s10 = sadd.s32 1, %s3020_s29 }
   0xd   : > { %p29_p0 = scmp.ge.s32.totalorder %s28_s9, 2  ;;  %s64_s11 = sadd.s32 1, %s3004_s25 }
   0xe   : > { %p71_p1 = scmp.ne.s32.totalorder %s3004_s25, %s3000_s24  ;;  %p72_p2 = scmp.eq.s32.totalorder %s3024_s30, 0 }
   0xf   : > { %s3982_s9 = smov (%p29_p0, %s28_s9), 0  ;;  %s3984_s10 = smov (!%p29_p0, %s31_s10), %s3020_s29 }
  0x10   : > { %s61_s12 = ssub.s32 %s3016_s28, %s3982_s9  ;;  %p3126_p3 = por %p72_p2, %p71_p1 }
  0x11   : > { %p33_p4 = scmp.ge.s32.totalorder %s3984_s10, 2  ;;  %p62_p5 = scmp.eq.s32.totalorder %s61_s12, 0 }
  0x12   : > { %s189_s14 = sadd.s32 1, %s2996_s23  ;;  %p199_p6 = scmp.ne.s32.totalorder %s2996_s23, %s2992_s22 }
  0x13   : > { %s3986_s10 = smov (%p33_p4, %s3984_s10), 0  ;;  %p200_p7 = scmp.eq.s32.totalorder %s2500_s7, 3 }
  0x14   : > { %s3136_s15 = scalar_select %p62_p5, %s3004_s25, %s64_s11  }
  0x15   : > { %s186_s16 = ssub.s32 %s3020_s29, %s3986_s10  ;;  %p205_p9 = scmp.ne.s32.totalorder %s2992_s22, %s2988_s21 }
  0x16   : > { %p187_p8 = scmp.eq.s32.totalorder %s186_s16, 0  ;;  %p3142_p10 = por %p200_p7, %p199_p6 }
  0x17   : > { %p206_p11 = scmp.eq.s32.totalorder %s2501_s8, 3  ;;  %p2503_p13 = scmp.ge.s32.totalorder %s3024_s30, 4 }
  0x18   : > { %s3147_s18 = scalar_select %p187_p8, %s2996_s23, %s189_s14  }
  0x19   : > { %p3149_p12 = por %p206_p11, %p205_p9  ;;  %225 = sbr.rel (%p2503_p13) target bundleno = 76 (0x4c), region = 20 }
  0x1e   : > { %238 = sbr.rel (!%p3126_p3) target bundleno = 76 (0x4c), region = 28  ;;  %s240_s20 = sand.u32 (%p3126_p3), 1, %s3004_s25  }
  0x1f   : > { %s2504_s7 = sshll.u32 (%p3126_p3), %s3016_s28, 2  ;;  %s2817_s11 = smul.u32 (%p3126_p3), 144, %s240_s20 }
  0x20   : > { %s3963_s1 = sld [smem:[#allocation7_spill]] (%p3126_p3) }
  0x21   : > { %s3166_s13 = scalar_lea.vmem (%p3126_p3), [#allocation2], %s2817_s11 }
  0x26   : > { %s3161_s8 = scalar_lea.vmem %s3963_s1, %s2504_s7 }
  0x27   : > { %v261_v0 = vld [vmem:[%s3161_s8] sm:$0xf]  ;;  %v263_v1 = vld [vmem:[%s3161_s8 + $0x8] sm:$0xf]  ;;  %v265_v2 = vld [vmem:[%s3161_s8 + $0x10] sm:$0xf] }
  0x28   : > { %262 = vst [vmem:[%s3166_s13] sm:$0xf] %v261_v0  ;;  %v267_v3 = vld [vmem:[%s3161_s8 + $0x18] sm:$0xf]  ;;  %v269_v4 = vld [vmem:[%s3161_s8 + $0x20] sm:$0xf] }
  0x29   : > { %264 = vst [vmem:[%s3166_s13 + $0x4] sm:$0xf] %v263_v1  ;;  %v271_v5 = vld [vmem:[%s3161_s8 + $0x28] sm:$0xf]  ;;  %v273_v6 = vld [vmem:[%s3161_s8 + $0x30] sm:$0xf] }
  0x2a   : > { %266 = vst [vmem:[%s3166_s13 + $0x8] sm:$0xf] %v265_v2  ;;  %v275_v7 = vld [vmem:[%s3161_s8 + $0x38] sm:$0xf]  ;;  %v277_v8 = vld [vmem:[%s3161_s8 + $0x40] sm:$0xf] }
  0x2b   : > { %268 = vst [vmem:[%s3166_s13 + $0xc] sm:$0xf] %v267_v3  ;;  %v279_v9 = vld [vmem:[%s3161_s8 + $0x48] sm:$0xf]  ;;  %v281_v10 = vld [vmem:[%s3161_s8 + $0x50] sm:$0xf] }
  0x2c   : > { %270 = vst [vmem:[%s3166_s13 + $0x10] sm:$0xf] %v269_v4  ;;  %v283_v11 = vld [vmem:[%s3161_s8 + $0x58] sm:$0xf]  ;;  %v285_v12 = vld [vmem:[%s3161_s8 + $0x60] sm:$0xf] }
  0x2d   : > { %272 = vst [vmem:[%s3166_s13 + $0x14] sm:$0xf] %v271_v5  ;;  %v287_v13 = vld [vmem:[%s3161_s8 + $0x68] sm:$0xf]  ;;  %v289_v14 = vld [vmem:[%s3161_s8 + $0x70] sm:$0xf] }
  0x2e   : > { %274 = vst [vmem:[%s3166_s13 + $0x18] sm:$0xf] %v273_v6  ;;  %v291_v15 = vld [vmem:[%s3161_s8 + $0x78] sm:$0xf]  ;;  %v293_v16 = vld [vmem:[%s3161_s8 + $0x80] sm:$0xf] }
  0x2f   : > { %276 = vst [vmem:[%s3166_s13 + $0x1c] sm:$0xf] %v275_v7  ;;  %v295_v17 = vld [vmem:[%s3161_s8 + $0x88] sm:$0xf]  ;;  %v297_v18 = vld [vmem:[%s3161_s8 + $0x90] sm:$0xf] }
  0x30   : > { %278 = vst [vmem:[%s3166_s13 + $0x20] sm:$0xf] %v277_v8  ;;  %v299_v19 = vld [vmem:[%s3161_s8 + $0x98] sm:$0xf]  ;;  %v301_v20 = vld [vmem:[%s3161_s8 + $0xa0] sm:$0xf] }
  0x31   : > { %280 = vst [vmem:[%s3166_s13 + $0x24] sm:$0xf] %v279_v9  ;;  %v303_v21 = vld [vmem:[%s3161_s8 + $0xa8] sm:$0xf]  ;;  %v305_v22 = vld [vmem:[%s3161_s8 + $0xb0] sm:$0xf] }
  0x32   : > { %282 = vst [vmem:[%s3166_s13 + $0x28] sm:$0xf] %v281_v10  ;;  %v307_v23 = vld [vmem:[%s3161_s8 + $0xb8] sm:$0xf]  ;;  %v309_v24 = vld [vmem:[%s3161_s8 + $0xc0] sm:$0xf] }
  0x33   : > { %284 = vst [vmem:[%s3166_s13 + $0x2c] sm:$0xf] %v283_v11  ;;  %v311_v25 = vld [vmem:[%s3161_s8 + $0xc8] sm:$0xf]  ;;  %v313_v26 = vld [vmem:[%s3161_s8 + $0xd0] sm:$0xf] }
  0x34   : > { %286 = vst [vmem:[%s3166_s13 + $0x30] sm:$0xf] %v285_v12  ;;  %v315_v27 = vld [vmem:[%s3161_s8 + $0xd8] sm:$0xf]  ;;  %v317_v28 = vld [vmem:[%s3161_s8 + $0xe0] sm:$0xf] }
  0x35   : > { %288 = vst [vmem:[%s3166_s13 + $0x34] sm:$0xf] %v287_v13  ;;  %v319_v29 = vld [vmem:[%s3161_s8 + $0xe8] sm:$0xf]  ;;  %v321_v30 = vld [vmem:[%s3161_s8 + $0xf0] sm:$0xf] }
  0x36   : > { %290 = vst [vmem:[%s3166_s13 + $0x38] sm:$0xf] %v289_v14  ;;  %v323_v31 = vld [vmem:[%s3161_s8 + $0xf8] sm:$0xf]  ;;  %v325_v32 = vld [vmem:[%s3161_s8 + $0x100] sm:$0xf] }
  0x37   : > { %292 = vst [vmem:[%s3166_s13 + $0x3c] sm:$0xf] %v291_v15  ;;  %v327_v33 = vld [vmem:[%s3161_s8 + $0x108] sm:$0xf]  ;;  %v329_v34 = vld [vmem:[%s3161_s8 + $0x110] sm:$0xf] }
  0x38   : > { %294 = vst [vmem:[%s3166_s13 + $0x40] sm:$0xf] %v293_v16  ;;  %v331_v35 = vld [vmem:[%s3161_s8 + $0x118] sm:$0xf] }
  0x39   : > { %296 = vst [vmem:[%s3166_s13 + $0x44] sm:$0xf] %v295_v17 }
  0x3a   : > { %298 = vst [vmem:[%s3166_s13 + $0x48] sm:$0xf] %v297_v18 }
  0x3b   : > { %300 = vst [vmem:[%s3166_s13 + $0x4c] sm:$0xf] %v299_v19 }
  0x3c   : > { %302 = vst [vmem:[%s3166_s13 + $0x50] sm:$0xf] %v301_v20 }
  0x3d   : > { %304 = vst [vmem:[%s3166_s13 + $0x54] sm:$0xf] %v303_v21 }
  0x3e   : > { %306 = vst [vmem:[%s3166_s13 + $0x58] sm:$0xf] %v305_v22 }
  0x3f   : > { %308 = vst [vmem:[%s3166_s13 + $0x5c] sm:$0xf] %v307_v23 }
  0x40   : > { %310 = vst [vmem:[%s3166_s13 + $0x60] sm:$0xf] %v309_v24 }
  0x41   : > { %312 = vst [vmem:[%s3166_s13 + $0x64] sm:$0xf] %v311_v25 }
  0x42   : > { %314 = vst [vmem:[%s3166_s13 + $0x68] sm:$0xf] %v313_v26 }
  0x43   : > { %316 = vst [vmem:[%s3166_s13 + $0x6c] sm:$0xf] %v315_v27 }
  0x44   : > { %318 = vst [vmem:[%s3166_s13 + $0x70] sm:$0xf] %v317_v28 }
  0x45   : > { %320 = vst [vmem:[%s3166_s13 + $0x74] sm:$0xf] %v319_v29 }
  0x46   : > { %322 = vst [vmem:[%s3166_s13 + $0x78] sm:$0xf] %v321_v30 }
  0x47   : > { %324 = vst [vmem:[%s3166_s13 + $0x7c] sm:$0xf] %v323_v31 }
  0x48   : > { %326 = vst [vmem:[%s3166_s13 + $0x80] sm:$0xf] %v325_v32 }
  0x49   : > { %328 = vst [vmem:[%s3166_s13 + $0x84] sm:$0xf] %v327_v33 }
  0x4a   : > { %330 = vst [vmem:[%s3166_s13 + $0x88] sm:$0xf] %v329_v34 }
  0x4b   : > { %332 = vst [vmem:[%s3166_s13 + $0x8c] sm:$0xf] %v331_v35 }
  0x4c PF: > { %p2505_p0 = scmp.ge.s32.totalorder %s3024_s30, 1  ;;  %p448_p1 = scmp.lt.s32.totalorder %s3024_s30, 5 }
  0x4e   : > { %p449_p2 = pnand %p2505_p0, %p448_p1 }
  0x4f   : > { %s455_s14 = sand.u32 (!%p449_p2), 1, %s3000_s24   ;;  %s3955_s20 = sand.u32 (!%p449_p2), 1, %s2992_s22  }
  0x50   : > { %452 = sbr.rel (%p449_p2) target bundleno = 735 (0x2df), region = 81  ;;  %s3243_s11 = sshll.u32 (!%p449_p2), %s3955_s20, 8 }
  0x51   : > { %s2818_s7 = smul.u32 (!%p449_p2), 144, %s455_s14  ;;  %s2507_s12 = sshll.u32 (!%p449_p2), %s3012_s27, 4 }
  0x52   : > { %p502_p3 = scmp.lt.s32.totalorder (!%p449_p2), %s2507_s12, 31  ;;  %s3964_s0 = sld [smem:[#allocation6_spill]] (!%p449_p2) }
  0x53   : > { %s3246_s16 = scalar_lea.vmem (!%p449_p2), [#allocation2], %s2818_s7  ;;  %p508_p4 = scmp.lt.s32.totalorder (!%p449_p2), %s3008_s26, 1 }
  0x54   : > { %s3969_s2 = sld [smem:[#allocation8_spill]] (!%p449_p2)  ;;  %p2767_p6 = scmp.ne.s32.totalorder (!%p449_p2), %s3008_s26, 0 }
  0x55   : > { %v2801_v36 = vld [vmem:[%s3246_s16 + $0x58] sm:$0xff]  ;;  %v2795_v37 = vld [vmem:[%s3246_s16 + $0x28] sm:$0xff]  ;;  %s3988_s12 = smov (!%p502_p3, %s2507_s12), 31  ;;  %v2800_v39 = vld [vmem:[%s3246_s16 + $0x50] sm:$0xff]  ;;  %vm582_vm0 = vsmask.f32 3328 }
  0x56   : > { %v2807_v38 = vld [vmem:[%s3246_s16 + $0x88] sm:$0xff]  ;;  %1117 = vmatpush.bf16.msra.mxu0 %v2801_v36  ;;  %1370 = vmatpush.bf16.msra.mxu1 %v2795_v37  ;;  %v2794_v40 = vld [vmem:[%s3246_s16 + $0x20] sm:$0xff]  ;;  %s2819_s24 = smul.u32 12, %s3988_s12  ;;  %v2793_v43 = vld [vmem:[%s3246_s16 + $0x18] sm:$0xff]  ;;  %vm583_vm1 = vsmask.f32 7440 }
  0x57   : > { %1767 = vmatpush.bf16.msra.mxu2 %v2807_v38  ;;  %v2806_v41 = vld [vmem:[%s3246_s16 + $0x80] sm:$0xff]  ;;  %v2799_v42 = vld [vmem:[%s3246_s16 + $0x48] sm:$0xff]  ;;  %v2805_v47 = vld [vmem:[%s3246_s16 + $0x78] sm:$0xff]  ;;  %vm1505_vm2 = vcmask 1042432   ;;  %vm1506_vm3 = vcmask 1046532   ;;  %vm1066_vm6 = vcmask 785408  }
  0x58   : > { %s3259_s14 = scalar_lea.vmem %s3964_s0, %s2819_s24  ;;  %v2798_v59 = vld [vmem:[%s3246_s16 + $0x40] sm:$0xff]  ;;  %v2792_v60 = vld [vmem:[%s3246_s16 + $0x10] sm:$0xff]  ;;  %vm3272_vm4 = vmor %vm1505_vm2, %vm1506_vm3  ;;  %s3970_s3 = sld [smem:[#allocation9_spill]] }
  0x59   : > { %v522_v44 = vld [vmem:[%s3259_s14] sm:$0xf]  ;;  %v523_v45 = vld [vmem:[%s3259_s14 + $0x4] sm:$0xf]  ;;  %v566_v46 = vld [vmem:[%s3259_s14 + $0x8] sm:$0x1] }
  0x5a   : > { %1118 = vmatpush.bf16.msra.mxu0 %v2800_v39  ;;  %1371 = vmatpush.bf16.msra.mxu1 %v2794_v40  ;;  %v586_v48 = vshrl.u32 %v522_v44, 16  ;;  %v589_v49 = vshll.u32 %v522_v44, 16  ;;  %v595_v50 = vshll.u32 %v523_v45, 16  ;;  %v599_v51 = vshrl.u32 %v523_v45, 16  ;;  %v1457_v53 = vld [vmem:[%s3259_s14] sm:$0xe]  ;;  %vm3281_vm5 = vmor %vm582_vm0, %vm583_vm1 }
  0x5b   : > { %1768 = vmatpush.bf16.msra.mxu2 %v2806_v41  ;;  %v605_v52 = vshll.u32 %v566_v46, 16  ;;  %v1510_v54 = vrot.slane %v523_v45, 5  ;;  %v2667_v61 = vrot.slane %v1457_v53, 9  ;;  %v1513_v62 = vrot.slane %v566_v46, 5  ;;  %v524_v63 = vld [vmem:[%s3259_s14 + $0xc] sm:$0xf] }
  0x5c   : > { %v588_v55 = vrot.slane %v586_v48, 4  ;;  %v591_v56 = vrot.slane %v589_v49, 5  ;;  %v597_v57 = vrot.slane %v595_v50, 5  ;;  %v601_v58 = vrot.slane %v599_v51, 4  ;;  %v2804_v0 = vld [vmem:[%s3246_s16 + $0x70] sm:$0xff]  ;;  %v2797_v11 = vld [vmem:[%s3246_s16 + $0x38] sm:$0xff] }
  0x5d   : > { %v607_v3 = vrot.slane %v605_v52, 5  ;;  %v1512_v5 = vrot.slane %v1510_v54, 4  ;;  %v3277_v6 = vld [vmem:[%s3259_s14 + $0x10] sm:$0xf]  ;;  %v610_v10 = vshrl.u32 %v524_v63, 16  ;;  %v2791_v12 = vld [vmem:[%s3246_s16 + $0x8] sm:$0xff]  ;;  %v1511_v13 = vsel %vm3272_vm4, %v2667_v61, %v1510_v54 }
  0x5e   : > { %1119 = vmatpush.bf16.msra.mxu0 %v2799_v42  ;;  %1372 = vmatpush.bf16.msra.mxu1 %v2793_v43  ;;  %v592_v1 = vor.u32 %v591_v56, %v588_v55  ;;  %v602_v2 = vor.u32 %v601_v58, %v597_v57  ;;  %v613_v14 = vshll.u32 %v524_v63, 16  ;;  %v619_v15 = vshll.u32 %v3277_v6, 16  ;;  %v2803_v17 = vld [vmem:[%s3246_s16 + $0x68] sm:$0xff]  ;;  %v2796_v25 = vld [vmem:[%s3246_s16 + $0x30] sm:$0xff]  ;;  %v2790_v26 = vld [vmem:[%s3246_s16] sm:$0xff]  ;;  %s509_s7 = scalar_select %p508_p4, %s3008_s26, 1 }
  0x5f   : > { %1769 = vmatpush.bf16.msra.mxu2 %v2805_v47  ;;  %v623_v16 = vshrl.u32 %v3277_v6, 16  ;;  %v1514_v20 = vsel %vm3272_vm4, %v1512_v5, %v1513_v62  ;;  %v1633_v23 = vunpack.c.l.b16 %v1511_v13  ;;  %v612_v24 = vrot.slane %v610_v10, 4  ;;  %v2802_v31 = vld [vmem:[%s3246_s16 + $0x60] sm:$0xff]  ;;  %v1458_v40 = vld [vmem:[%s3259_s14 + $0xc] sm:$0xe] }
  0x60   : > { %v593_v8 = vrot.slane %v592_v1, 4  ;;  %v603_v9 = vrot.slane %v602_v2, 4  ;;  %v1634_v27 = vunpack.c.l.b16 %v1514_v20  ;;  %v615_v28 = vrot.slane %v613_v14, 5  ;;  %v567_v32 = vld [vmem:[%s3259_s14 + $0x14] sm:$0x1]  ;;  %v2774_v34 = vld [vmem:[%s3259_s14] sm:$0xff]  ;;  %s3315_s24 = scalar_lea.vmem %s3969_s2, %s509_s7  ;;  %s3320_s20 = scalar_lea.vmem %s3970_s3, %s509_s7 }
  0x61   : > { %v621_v29 = vrot.slane %v619_v15, 5  ;;  %v625_v30 = vrot.slane %v623_v16, 4  ;;  %v629_v38 = vshll.u32 %v567_v32, 16  ;;  %v1517_v39 = vrot.slane %v3277_v6, 5  ;;  %v526_v44 = vld [vmem:[%s3259_s14 + $0x18] sm:$0xf] }
  0x62   : > { %1120 = vmatpush.bf16.msra.mxu0 %v2798_v59  ;;  %1373 = vmatpush.bf16.msra.mxu1 %v2792_v60  ;;  %v598_v18 = vsel %vm3281_vm5, %v593_v8, %v597_v57  ;;  %v608_v19 = vsel %vm3281_vm5, %v603_v9, %v607_v3  ;;  %v1665_v35 = vpack.c.b16 %v1634_v27, %v1633_v23  ;;  %v2668_v45 = vrot.slane %v1458_v40, 9  ;;  %v527_v48 = vld [vmem:[%s3259_s14 + $0x1c] sm:$0xf]  ;;  %v568_v1 = vld [vmem:[%s3259_s14 + $0x20] sm:$0x1]  ;;  %v2775_v3 = vld [vmem:[%s3259_s14 + $0xc] sm:$0xff] }
  0x63   : > { %1770 = vmatpush.bf16.msra.mxu2 %v2804_v0  ;;  %v982_v21 = vunpack.c.l.b16 %v598_v18  ;;  %v983_v22 = vunpack.c.l.b16 %v608_v19  ;;  %v616_v36 = vor.u32 %v615_v28, %v612_v24  ;;  %v626_v37 = vor.u32 %v625_v30, %v621_v29  ;;  %v528_v18 = vld [vmem:[%s3259_s14 + $0x24] sm:$0xf]  ;;  %v529_v19 = vld [vmem:[%s3259_s14 + $0x28] sm:$0xf]  ;;  %s2509_s7 = sshll.u32 %s3008_s26, 4 }
  0x64   : > { %v631_v43 = vrot.slane %v629_v38, 5  ;;  %v1519_v46 = vrot.slane %v1517_v39, 4  ;;  %v1520_v47 = vrot.slane %v567_v32, 5  ;;  %v634_v49 = vshrl.u32 %v526_v44, 16  ;;  %v2776_v38 = vld [vmem:[%s3259_s14 + $0x18] sm:$0xff]  ;;  %p515_p5 = scmp.lt.s32.totalorder %s2509_s7, 31 }
  0x65   : > { %v1014_v33 = vpack.c.b16 %v983_v22, %v982_v21  ;;  %v617_v41 = vrot.slane %v616_v36, 4  ;;  %v627_v42 = vrot.slane %v626_v37, 4  ;;  %v637_v50 = vshll.u32 %v526_v44, 16  ;;  %v569_v36 = vld [vmem:[%s3259_s14 + $0x2c] sm:$0x1] }
  0x66   : > { %1121 = vmatpush.bf16.msra.mxu0 %v2797_v11  ;;  %1374 = vmatpush.bf16.msra.mxu1 %v2791_v12  ;;  %v643_v53 = vshll.u32 %v527_v48, 16  ;;  %v647_v54 = vshrl.u32 %v527_v48, 16  ;;  %v1518_v55 = vsel %vm3272_vm4, %v2668_v45, %v1517_v39  ;;  %v1521_v56 = vsel %vm3272_vm4, %v1519_v46, %v1520_v47  ;;  %v1459_v11 = vld [vmem:[%s3259_s14 + $0x18] sm:$0xe]  ;;  %v1460_v44 = vld [vmem:[%s3259_s14 + $0x24] sm:$0xe] }
  0x67   : > { %1771 = vmatpush.bf16.msra.mxu2 %v2803_v17  ;;  %v622_v51 = vsel %vm3281_vm5, %v617_v41, %v621_v29  ;;  %v632_v52 = vsel %vm3281_vm5, %v627_v42, %v631_v43  ;;  %v636_v59 = vrot.slane %v634_v49, 4  ;;  %v639_v60 = vrot.slane %v637_v50, 5  ;;  %v530_v45 = vld [vmem:[%s3259_s14 + $0x30] sm:$0xf]  ;;  %v531_v49 = vld [vmem:[%s3259_s14 + $0x34] sm:$0xf] }
  0x68   : > { %v984_v57 = vunpack.c.l.b16 %v622_v51  ;;  %v985_v58 = vunpack.c.l.b16 %v632_v52  ;;  %v1635_v61 = vunpack.c.l.b16 %v1518_v55  ;;  %v1636_v62 = vunpack.c.l.b16 %v1521_v56  ;;  %s3990_s7 = smov (!%p515_p5, %s2509_s7), 31 }
  0x69   : > { %v645_v63 = vrot.slane %v643_v53, 5  ;;  %v649_v0 = vrot.slane %v647_v54, 4  ;;  %v640_v5 = vor.u32 %v639_v60, %v636_v59  ;;  %v1524_v6 = vrot.slane %v527_v48, 5  ;;  %s2510_s12 = sshll.u32 %s3990_s7, 2 }
  0x6a   : > { %1122 = vmatpush.bf16.msra.mxu0 %v2796_v25  ;;  %1375 = vmatpush.bf16.msra.mxu1 %v2790_v26  ;;  %v1015_v2 = vpack.c.b16 %v985_v58, %v984_v57  ;;  %v1666_v8 = vpack.c.b16 %v1636_v62, %v1635_v61  ;;  %v653_v10 = vshll.u32 %v568_v1, 16  ;;  %v2669_v13 = vrot.slane %v1459_v11, 9  ;;  %v2777_v11 = vld [vmem:[%s3259_s14 + $0x24] sm:$0xff]  ;;  %s3401_s13 = scalar_lea.vmem %s3952_s4, %s2510_s12 }
  0x6b   : > { %1772 = vmatpush.bf16.msra.mxu2 %v2802_v31  ;;  %v650_v9 = vor.u32 %v649_v0, %v645_v63  ;;  %v641_v12 = vrot.slane %v640_v5, 4  ;;  %v1526_v14 = vrot.slane %v1524_v6, 4  ;;  %v1527_v15 = vrot.slane %v568_v1, 5  ;;  %v570_v1 = vld [vmem:[%s3259_s14 + $0x38] sm:$0x1] }
  0x6c   : > { %v655_v17 = vrot.slane %v653_v10, 5  ;;  %v1525_v21 = vsel %vm3272_vm4, %v2669_v13, %v1524_v6  ;;  %v658_v23 = vshrl.u32 %v528_v18, 16  ;;  %v661_v25 = vshll.u32 %v528_v18, 16 }
  0x6d   : > { %2547 = vmatmul.msk.bf16.vlgmr.msra.gmra.mxu0 %vm1066_vm6, %v1014_v33  ;;  %2651 = vmatmul.msk.bf16.vlgmr.msra.gmra.mxu1 %vm1066_vm6, %v2774_v34  ;;  %v651_v16 = vrot.slane %v650_v9, 4  ;;  %v646_v20 = vsel %vm3281_vm5, %v641_v12, %v645_v63  ;;  %v1528_v22 = vsel %vm3272_vm4, %v1526_v14, %v1527_v15  ;;  %v667_v26 = vshll.u32 %v529_v19, 16  ;;  %v1461_v15 = vld [vmem:[%s3259_s14 + $0x30] sm:$0xe] }
  0x6e   : > { %2719 = vmatmul.msk.bf16.vlgmr.msra.gmra.mxu2 %vm1066_vm6, %v1665_v35  ;;  %v671_v27 = vshrl.u32 %v529_v19, 16  ;;  %v986_v28 = vunpack.c.l.b16 %v646_v20  ;;  %v1637_v30 = vunpack.c.l.b16 %v1525_v21  ;;  %v1638_v31 = vunpack.c.l.b16 %v1528_v22  ;;  %v532_v22 = vld [vmem:[%s3259_s14 + $0x3c] sm:$0xf] }
  0x6f   : > { %v656_v24 = vsel %vm3281_vm5, %v651_v16, %v655_v17  ;;  %v660_v32 = vrot.slane %v658_v23, 4  ;;  %v663_v33 = vrot.slane %v661_v25, 5  ;;  %v669_v34 = vrot.slane %v667_v26, 5  ;;  %v533_v23 = vld [vmem:[%s3259_s14 + $0x40] sm:$0xf] }
  0x70   : > { %v987_v29 = vunpack.c.l.b16 %v656_v24  ;;  %v673_v35 = vrot.slane %v671_v27, 4  ;;  %v1667_v39 = vpack.c.b16 %v1638_v31, %v1637_v30  ;;  %v677_v42 = vshll.u32 %v569_v36, 16 }
  0x71   : > { %v664_v40 = vor.u32 %v663_v33, %v660_v32  ;;  %v1531_v43 = vrot.slane %v529_v19, 5  ;;  %v2670_v50 = vrot.slane %v1460_v44, 9  ;;  %v1534_v52 = vrot.slane %v569_v36, 5 }
  0x72   : > { %v1016_v37 = vpack.c.b16 %v987_v29, %v986_v28  ;;  %v674_v41 = vor.u32 %v673_v35, %v669_v34  ;;  %v679_v48 = vrot.slane %v677_v42, 5  ;;  %v682_v53 = vshrl.u32 %v530_v45, 16  ;;  %v2778_v42 = vld [vmem:[%s3259_s14 + $0x30] sm:$0xff] }
  0x73   : > { %v665_v46 = vrot.slane %v664_v40, 4  ;;  %v1533_v51 = vrot.slane %v1531_v43, 4  ;;  %v685_v54 = vshll.u32 %v530_v45, 16  ;;  %v691_v55 = vshll.u32 %v531_v49, 16  ;;  %v571_v40 = vld [vmem:[%s3259_s14 + $0x44] sm:$0x1] }
  0x74   : > { %v675_v47 = vrot.slane %v674_v41, 4  ;;  %v695_v56 = vshrl.u32 %v531_v49, 16  ;;  %v1532_v59 = vsel %vm3272_vm4, %v2670_v50, %v1531_v43  ;;  %v684_v61 = vrot.slane %v682_v53, 4  ;;  %v535_v53 = vld [vmem:[%s3259_s14 + $0x4c] sm:$0xf] }
  0x75   : > { %v670_v57 = vsel %vm3281_vm5, %v665_v46, %v669_v34  ;;  %v1535_v60 = vsel %vm3272_vm4, %v1533_v51, %v1534_v52  ;;  %v687_v62 = vrot.slane %v685_v54, 5  ;;  %v1639_v5 = vunpack.c.l.b16 %v1532_v59 }
  0x76   : > { %v680_v58 = vsel %vm3281_vm5, %v675_v47, %v679_v48  ;;  %v988_v63 = vunpack.c.l.b16 %v670_v57  ;;  %v1640_v6 = vunpack.c.l.b16 %v1535_v60  ;;  %v701_v9 = vshll.u32 %v570_v1, 16  ;;  %v1462_v48 = vld [vmem:[%s3259_s14 + $0x3c] sm:$0xe] }
  0x77   : > { %v989_v0 = vunpack.c.l.b16 %v680_v58  ;;  %v1538_v13 = vrot.slane %v531_v49, 5  ;;  %v2671_v19 = vrot.slane %v1461_v15, 9  ;;  %v1541_v21 = vrot.slane %v570_v1, 5  ;;  %v534_v49 = vld [vmem:[%s3259_s14 + $0x48] sm:$0xf]  ;;  %v2779_v15 = vld [vmem:[%s3259_s14 + $0x3c] sm:$0xff] }
  0x78   : > { %v1668_v14 = vpack.c.b16 %v1640_v6, %v1639_v5  ;;  %v703_v17 = vrot.slane %v701_v9, 5  ;;  %v706_v28 = vshrl.u32 %v532_v22, 16  ;;  %v709_v29 = vshll.u32 %v532_v22, 16  ;;  %v572_v6 = vld [vmem:[%s3259_s14 + $0x50] sm:$0x1] }
  0x79   : > { %v1017_v10 = vpack.c.b16 %v989_v0, %v988_v63  ;;  %v1540_v20 = vrot.slane %v1538_v13, 4  ;;  %v1539_v26 = vsel %vm3272_vm4, %v2671_v19, %v1538_v13  ;;  %v715_v30 = vshll.u32 %v533_v23, 16  ;;  %v1463_v19 = vld [vmem:[%s3259_s14 + $0x48] sm:$0xe] }
  0x7a   : > { %v719_v31 = vshrl.u32 %v533_v23, 16  ;;  %v1641_v34 = vunpack.c.l.b16 %v1539_v26  ;;  %v708_v36 = vrot.slane %v706_v28, 4  ;;  %v725_v46 = vshll.u32 %v571_v40, 16  ;;  %v2815_v26 = vld [vmem:[%s3401_s13 + $0x38] sm:$0xff] }
  0x7b   : > { %v1542_v27 = vsel %vm3272_vm4, %v1540_v20, %v1541_v21  ;;  %v1545_v47 = vrot.slane %v533_v23, 5  ;;  %v2672_v54 = vrot.slane %v1462_v48, 9  ;;  %v730_v57 = vshrl.u32 %v534_v49, 16  ;;  %v537_v28 = vld [vmem:[%s3259_s14 + $0x58] sm:$0xf]  ;;  %2102 = vmatpush.bf16.msra.mxu3 %v2815_v26  ;;  %v2814_v48 = vld [vmem:[%s3401_s13 + $0x30] sm:$0xff] }
  0x7c   : > { %v1642_v35 = vunpack.c.l.b16 %v1542_v27  ;;  %v727_v52 = vrot.slane %v725_v46, 5  ;;  %v733_v58 = vshll.u32 %v534_v49, 16  ;;  %v739_v59 = vshll.u32 %v535_v53, 16  ;;  %v536_v27 = vld [vmem:[%s3259_s14 + $0x54] sm:$0xf] }
  0x7d   : > { %2548 = vmatmul.msk.bf16.gmra.mxu0 %vm1066_vm6, %v1015_v2  ;;  %2652 = vmatmul.msk.bf16.gmra.mxu1 %vm1066_vm6, %v2775_v3  ;;  %v693_v2 = vrot.slane %v691_v55, 5  ;;  %v697_v3 = vrot.slane %v695_v56, 4  ;;  %v1547_v55 = vrot.slane %v1545_v47, 4  ;;  %v1548_v56 = vrot.slane %v571_v40, 5 }
  0x7e   : > { %2720 = vmatmul.msk.bf16.gmra.mxu2 %vm1066_vm6, %v1666_v8  ;;  %v688_v8 = vor.u32 %v687_v62, %v684_v61  ;;  %v1669_v43 = vpack.c.b16 %v1642_v35, %v1641_v34  ;;  %v743_v60 = vshrl.u32 %v535_v53, 16  ;;  %v1546_v63 = vsel %vm3272_vm4, %v2672_v54, %v1545_v47  ;;  %v2780_v47 = vld [vmem:[%s3259_s14 + $0x48] sm:$0xff]  ;;  %v1464_v54 = vld [vmem:[%s3259_s14 + $0x54] sm:$0xe] }
  0x7f   : > { %v698_v12 = vor.u32 %v697_v3, %v693_v2  ;;  %v1549_v0 = vsel %vm3272_vm4, %v1547_v55, %v1548_v56  ;;  %v732_v1 = vrot.slane %v730_v57, 4  ;;  %v749_v13 = vshll.u32 %v572_v6, 16  ;;  %2103 = vmatpush.bf16.msra.mxu3 %v2814_v48  ;;  %v538_v55 = vld [vmem:[%s3259_s14 + $0x60] sm:$0xf]  ;;  %v539_v56 = vld [vmem:[%s3259_s14 + $0x64] sm:$0xf] }
  0x80   : > { %v689_v16 = vrot.slane %v688_v8, 4  ;;  %v741_v8 = vrot.slane %v739_v59, 5  ;;  %v745_v9 = vrot.slane %v743_v60, 4  ;;  %v2673_v23 = vrot.slane %v1463_v19, 9  ;;  %v2813_v57 = vld [vmem:[%s3401_s13 + $0x28] sm:$0xff] }
  0x81   : > { %v699_v18 = vrot.slane %v698_v12, 4  ;;  %v751_v21 = vrot.slane %v749_v13, 5  ;;  %v757_v34 = vshll.u32 %v536_v27, 16  ;;  %v763_v35 = vshll.u32 %v537_v28, 16 }
  0x82   : > { %v694_v24 = vsel %vm3281_vm5, %v689_v16, %v693_v2  ;;  %v735_v2 = vrot.slane %v733_v58, 5  ;;  %v746_v16 = vor.u32 %v745_v9, %v741_v8  ;;  %v1566_v26 = vrot.slane %v539_v56, 5 }
  0x83   : > { %v704_v25 = vsel %vm3281_vm5, %v699_v18, %v703_v17  ;;  %v990_v32 = vunpack.c.l.b16 %v694_v24  ;;  %v1552_v17 = vrot.slane %v535_v53, 5  ;;  %v1559_v53 = vrot.slane %v537_v28, 5  ;;  %2104 = vmatpush.bf16.msra.mxu3 %v2813_v57 }
  0x84   : > { %v991_v33 = vunpack.c.l.b16 %v704_v25  ;;  %v736_v12 = vor.u32 %v735_v2, %v732_v1  ;;  %v747_v22 = vrot.slane %v746_v16, 4  ;;  %v1555_v25 = vrot.slane %v572_v6, 5 }
  0x85   : > { %v1554_v24 = vrot.slane %v1552_v17, 4  ;;  %v781_v1 = vshll.u32 %v538_v55, 16  ;;  %v787_v2 = vshll.u32 %v539_v56, 16 }
  0x86   : > { %v1018_v41 = vpack.c.b16 %v991_v33, %v990_v32  ;;  %v737_v20 = vrot.slane %v736_v12, 4  ;;  %v754_v33 = vshrl.u32 %v536_v27, 16  ;;  %v2810_v27 = vld [vmem:[%s3401_s13 + $0x10] sm:$0xff] }
  0x87   : > { %v1556_v32 = vsel %vm3272_vm4, %v1554_v24, %v1555_v25  ;;  %v783_v12 = vrot.slane %v781_v1, 5  ;;  %v789_v13 = vrot.slane %v787_v2, 5  ;;  %v2781_v24 = vld [vmem:[%s3259_s14 + $0x54] sm:$0xff]  ;;  %v1466_v2 = vld [vmem:[%s3259_s14 + $0x6c] sm:$0xe] }
  0x88   : > { %v1646_v40 = vunpack.c.l.b16 %v1556_v32 }
  0x8d   : > { %2549 = vmatmul.msk.bf16.gmra.mxu0 %vm1066_vm6, %v1016_v37  ;;  %2653 = vmatmul.msk.bf16.gmra.mxu1 %vm1066_vm6, %v2776_v38  ;;  %v711_v37 = vrot.slane %v709_v29, 5  ;;  %v717_v38 = vrot.slane %v715_v30, 5  ;;  %v742_v29 = vsel %vm3281_vm5, %v737_v20, %v741_v8  ;;  %v752_v30 = vsel %vm3281_vm5, %v747_v22, %v751_v21  ;;  %v574_v20 = vld [vmem:[%s3259_s14 + $0x68] sm:$0x1] }
  0x8e   : > { %2721 = vmatmul.msk.bf16.gmra.mxu2 %vm1066_vm6, %v1667_v39  ;;  %v721_v39 = vrot.slane %v719_v31, 4  ;;  %v1553_v31 = vsel %vm3272_vm4, %v2673_v23, %v1552_v17  ;;  %v2811_v17 = vld [vmem:[%s3401_s13 + $0x18] sm:$0xff]  ;;  %v797_v25 = vshll.u32 %v574_v20, 16 }
  0x8f   : > { %v712_v44 = vor.u32 %v711_v37, %v708_v36  ;;  %v767_v36 = vshrl.u32 %v537_v28, 16  ;;  %v994_v37 = vunpack.c.l.b16 %v742_v29  ;;  %v1465_v29 = vld [vmem:[%s3259_s14 + $0x60] sm:$0xe] }
  0x90   : > { %v722_v45 = vor.u32 %v721_v39, %v717_v38  ;;  %v1645_v39 = vunpack.c.l.b16 %v1553_v31  ;;  %v799_v32 = vrot.slane %v797_v25, 5 }
  0x91   : > { %v713_v50 = vrot.slane %v712_v44, 4  ;;  %v769_v44 = vrot.slane %v767_v36, 4  ;;  %v2809_v36 = vld [vmem:[%s3401_s13 + $0x8] sm:$0xff] }
  0x92   : > { %v723_v51 = vrot.slane %v722_v45, 4  ;;  %v573_v45 = vld [vmem:[%s3259_s14 + $0x5c] sm:$0x1]  ;;  %v1671_v49 = vpack.c.b16 %v1646_v40, %v1645_v39 }
  0x93   : > { %v718_v61 = vsel %vm3281_vm5, %v713_v50, %v717_v38  ;;  %v995_v38 = vunpack.c.l.b16 %v752_v30 }
  0x94   : > { %v728_v62 = vsel %vm3281_vm5, %v723_v51, %v727_v52  ;;  %v992_v3 = vunpack.c.l.b16 %v718_v61  ;;  %v773_v52 = vshll.u32 %v573_v45, 16  ;;  %v2674_v61 = vrot.slane %v1464_v54, 9 }
  0x95   : > { %v993_v5 = vunpack.c.l.b16 %v728_v62  ;;  %v1020_v46 = vpack.c.b16 %v995_v38, %v994_v37  ;;  %v1561_v62 = vrot.slane %v1559_v53, 4  ;;  %v540_v37 = vld [vmem:[%s3259_s14 + $0x6c] sm:$0xf]  ;;  %v541_v38 = vld [vmem:[%s3259_s14 + $0x70] sm:$0xf] }
  0x96   : > { %v775_v60 = vrot.slane %v773_v52, 5  ;;  %v1560_v9 = vsel %vm3272_vm4, %v2674_v61, %v1559_v53  ;;  %v1573_v1 = vrot.slane %v541_v38, 5 }
  0x9d   : > { %2550 = vmatmul.msk.bf16.gmra.mxu0 %vm1066_vm6, %v1017_v10  ;;  %2654 = vmatmul.msk.bf16.gmra.mxu1 %vm1066_vm6, %v2777_v11  ;;  %v1643_v10 = vunpack.c.l.b16 %v1546_v63  ;;  %v1644_v11 = vunpack.c.l.b16 %v1549_v0  ;;  %v1562_v63 = vrot.slane %v573_v45, 5  ;;  %v778_v0 = vshrl.u32 %v538_v55, 16 }
  0x9e   : > { %2722 = vmatmul.msk.bf16.gmra.mxu2 %vm1066_vm6, %v1668_v14  ;;  %v1019_v14 = vpack.c.b16 %v993_v5, %v992_v3  ;;  %v791_v3 = vshrl.u32 %v539_v56, 16  ;;  %v2812_v5 = vld [vmem:[%s3401_s13 + $0x20] sm:$0xff]  ;;  %v805_v45 = vshll.u32 %v540_v37, 16  ;;  %v575_v56 = vld [vmem:[%s3259_s14 + $0x74] sm:$0x1] }
  0x9f   : > { %v1670_v18 = vpack.c.b16 %v1644_v11, %v1643_v10  ;;  %v1563_v10 = vsel %vm3272_vm4, %v1561_v62, %v1562_v63  ;;  %2105 = vmatpush.bf16.msra.mxu3 %v2812_v5  ;;  %v780_v11 = vrot.slane %v778_v0, 4  ;;  %v821_v0 = vshll.u32 %v575_v56, 16  ;;  %v3463_v5 = vld [vmem:[%s3259_s14 + $0x7c] sm:$0xf] }
  0xa0   : > { %v1648_v19 = vunpack.c.l.b16 %v1563_v10  ;;  %v807_v53 = vrot.slane %v805_v45, 5 }
  0xa1   : > { %v784_v21 = vor.u32 %v783_v12, %v780_v11  ;;  %v823_v10 = vrot.slane %v821_v0, 5  ;;  %v2676_v11 = vrot.slane %v1466_v2, 9  ;;  %v1575_v12 = vrot.slane %v1573_v1, 4 }
  0xa3   : > { %2106 = vmatpush.bf16.msra.mxu3 %v2811_v17  ;;  %v785_v30 = vrot.slane %v784_v21, 4  ;;  %v839_v17 = vshrl.u32 %v3463_v5, 16  ;;  %v1574_v25 = vsel %vm3272_vm4, %v2676_v11, %v1573_v1 }
  0xa5   : > { %v790_v39 = vsel %vm3281_vm5, %v785_v30, %v789_v13  ;;  %v841_v30 = vrot.slane %v839_v17, 4 }
  0xa6   : > { %v998_v48 = vunpack.c.l.b16 %v790_v39 }
  0xa7   : > { %2107 = vmatpush.bf16.msra.mxu3 %v2810_v27 }
  0xab   : > { %2108 = vmatpush.bf16.msra.mxu3 %v2809_v36  ;;  %v1651_v36 = vunpack.c.l.b16 %v1574_v25 }
  0xad   : > { %2551 = vmatmul.msk.bf16.gmra.mxu0 %vm1066_vm6, %v1018_v41  ;;  %2655 = vmatmul.msk.bf16.gmra.mxu1 %vm1066_vm6, %v2778_v42  ;;  %v756_v41 = vrot.slane %v754_v33, 4  ;;  %v759_v42 = vrot.slane %v757_v34, 5  ;;  %v2675_v33 = vrot.slane %v1465_v29, 9  ;;  %v1568_v34 = vrot.slane %v1566_v26, 4 }
  0xae   : > { %2723 = vmatmul.msk.bf16.gmra.mxu2 %vm1066_vm6, %v1669_v43  ;;  %v765_v43 = vrot.slane %v763_v35, 5  ;;  %v1569_v35 = vrot.slane %v574_v20, 5  ;;  %v3469_v20 = vld [vmem:[%s3315_s24] ss:$0 sm:$0xff] }
  0xaf   : > { %v760_v50 = vor.u32 %v759_v42, %v756_v41  ;;  %v1567_v41 = vsel %vm3272_vm4, %v2675_v33, %v1566_v26  ;;  %v576_v33 = vld [vmem:[%s3259_s14 + $0x80] sm:$0x1] }
  0xb0   : > { %v770_v51 = vor.u32 %v769_v44, %v765_v43  ;;  %v1570_v42 = vsel %vm3272_vm4, %v1568_v34, %v1569_v35  ;;  %v802_v44 = vshrl.u32 %v540_v37, 16  ;;  %v3482_v35 = vld [vmem:[%s3320_s20] ss:$0 sm:$0xff] }
  0xb1   : > { %v761_v58 = vrot.slane %v760_v50, 4  ;;  %v1649_v50 = vunpack.c.l.b16 %v1567_v41  ;;  %v845_v41 = vshll.u32 %v576_v33, 16 }
  0xb2   : > { %v771_v59 = vrot.slane %v770_v51, 4  ;;  %v1650_v51 = vunpack.c.l.b16 %v1570_v42  ;;  %v804_v52 = vrot.slane %v802_v44, 4  ;;  %v2783_v44 = vld [vmem:[%s3259_s14 + $0x6c] sm:$0xff] }
  0xb3   : > { %v766_v6 = vsel %vm3281_vm5, %v761_v58, %v765_v43  ;;  %v2808_v43 = vld [vmem:[%s3401_s13] sm:$0xff] }
  0xb4   : > { %v776_v8 = vsel %vm3281_vm5, %v771_v59, %v775_v60  ;;  %2109 = vmatpush.bf16.msra.mxu3 %v2808_v43  ;;  %v2782_v58 = vld [vmem:[%s3259_s14 + $0x60] sm:$0xff]  ;;  %v1673_v61 = vpack.c.b16 %v1650_v51, %v1649_v50  ;;  %v808_v62 = vor.u32 %v807_v53, %v804_v52  ;;  %v1467_v50 = vld [vmem:[%s3259_s14 + $0x78] sm:$0xe]  ;;  %v1580_v51 = vrot.slane %v3463_v5, 5 }
  0xb5   : > { %v997_v16 = vunpack.c.l.b16 %v776_v8 }
  0xb6   : > { %v809_v8 = vrot.slane %v808_v62, 4  ;;  %v1582_v62 = vrot.slane %v1580_v51, 4 }
  0xbd   : > { %2552 = vmatmul.msk.bf16.gmra.mxu0 %vm1066_vm6, %v1019_v14  ;;  %2656 = vmatmul.msk.bf16.gmra.mxu1 %vm1066_vm6, %v2779_v15  ;;  %v793_v14 = vrot.slane %v791_v3, 4  ;;  %v996_v15 = vunpack.c.l.b16 %v766_v6  ;;  %v542_v3 = vld [vmem:[%s3259_s14 + $0x78] sm:$0xf] }
  0xbe   : > { %2724 = vmatmul.msk.bf16.gmra.mxu2 %vm1066_vm6, %v1670_v18  ;;  %v1647_v18 = vunpack.c.l.b16 %v1560_v9 }
  0xbf   : > { %v794_v22 = vor.u32 %v793_v14, %v789_v13  ;;  %v1021_v23 = vpack.c.b16 %v997_v16, %v996_v15  ;;  %v1576_v13 = vrot.slane %v575_v56, 5  ;;  %v826_v14 = vshrl.u32 %v542_v3, 16 }
  0xc0   : > { %v1672_v28 = vpack.c.b16 %v1648_v19, %v1647_v18  ;;  %v829_v15 = vshll.u32 %v542_v3, 16  ;;  %v835_v16 = vshll.u32 %v3463_v5, 16  ;;  %v2677_v56 = vrot.slane %v1467_v50, 9 }
  0xc1   : > { %v795_v31 = vrot.slane %v794_v22, 4  ;;  %v1577_v26 = vsel %vm3272_vm4, %v1575_v12, %v1576_v13  ;;  %v828_v27 = vrot.slane %v826_v14, 4 }
  0xc2   : > { %v837_v29 = vrot.slane %v835_v16, 5  ;;  %v1652_v37 = vunpack.c.l.b16 %v1577_v26  ;;  %v1581_v5 = vsel %vm3272_vm4, %v2677_v56, %v1580_v51  ;;  %v577_v26 = vld [vmem:[%s3259_s14 + $0x8c] sm:$0x1] }
  0xc3   : > { %v800_v40 = vsel %vm3281_vm5, %v795_v31, %v799_v32 }
  0xcd   : > { %2553 = vmatmul.msk.bf16.gmra.mxu0 %vm1066_vm6, %v1020_v46  ;;  %2657 = vmatmul.msk.bf16.gmra.mxu1 %vm1066_vm6, %v2780_v47  ;;  %v811_v46 = vshll.u32 %v541_v38, 16  ;;  %v815_v47 = vshrl.u32 %v541_v38, 16 }
  0xce   : > { %2725 = vmatmul.msk.bf16.gmra.mxu2 %vm1066_vm6, %v1671_v49  ;;  %v999_v49 = vunpack.c.l.b16 %v800_v40  ;;  %v842_v40 = vor.u32 %v841_v30, %v837_v29 }
  0xcf   : > { %v813_v54 = vrot.slane %v811_v46, 5  ;;  %v817_v55 = vrot.slane %v815_v47, 4 }
  0xd0   : > { %v1022_v57 = vpack.c.b16 %v999_v49, %v998_v48  ;;  %v1674_v49 = vpack.c.b16 %v1652_v37, %v1651_v36 }
  0xd1   : > { %v818_v63 = vor.u32 %v817_v55, %v813_v54  ;;  %v847_v55 = vrot.slane %v845_v41, 5 }
  0xd3   : > { %v819_v9 = vrot.slane %v818_v63, 4  ;;  %v1583_v63 = vrot.slane %v576_v33, 5 }
  0xd5   : > { %v1584_v16 = vsel %vm3272_vm4, %v1582_v62, %v1583_v63 }
  0xd6   : > { %v1654_v25 = vunpack.c.l.b16 %v1584_v16 }
  0xdd   : > { %2554 = vmatmul.msk.bf16.gmra.mxu0 %vm1066_vm6, %v1021_v23  ;;  %2658 = vmatmul.msk.bf16.gmra.mxu1 %vm1066_vm6, %v2781_v24  ;;  %v814_v23 = vsel %vm3281_vm5, %v809_v8, %v813_v54  ;;  %v824_v24 = vsel %vm3281_vm5, %v819_v9, %v823_v10  ;;  %v843_v54 = vrot.slane %v842_v40, 4 }
  0xde   : > { %2726 = vmatmul.msk.bf16.gmra.mxu2 %vm1066_vm6, %v1672_v28  ;;  %v831_v28 = vrot.slane %v829_v15, 5  ;;  %v1000_v31 = vunpack.c.l.b16 %v814_v23  ;;  %v1001_v32 = vunpack.c.l.b16 %v824_v24 }
  0xdf   : > { %v848_v2 = vsel %vm3281_vm5, %v843_v54, %v847_v55  ;;  %v1590_v55 = vrot.slane %v577_v26, 5 }
  0xe0   : > { %v832_v39 = vor.u32 %v831_v28, %v828_v27  ;;  %v1023_v43 = vpack.c.b16 %v1001_v32, %v1000_v31  ;;  %v2784_v32 = vld [vmem:[%s3259_s14 + $0x78] sm:$0xff] }
  0xe2   : > { %v833_v53 = vrot.slane %v832_v39, 4 }
  0xe4   : > { %v838_v1 = vsel %vm3281_vm5, %v833_v53, %v837_v29 }
  0xea   : > { %v1124_v59 = vpop.f32.mrf.mxu0  ;;  %v1377_v60 = vpop.f32.mrf.mxu1 }
  0xeb   : > { %v1378_v6 = vadd.f32 %v1377_v60, %v1124_v59  ;;  %v544_v60 = vld [vmem:[%s3259_s14 + $0x84] sm:$0xf] }
  0xec   : > { %v853_v8 = vshll.u32 %v544_v60, 16 }
  0xed   : > { %2555 = vmatmul.msk.bf16.gmra.mxu0 %vm1066_vm6, %v1022_v57  ;;  %2659 = vmatmul.msk.bf16.gmra.mxu1 %vm1066_vm6, %v2782_v58 }
  0xee   : > { %2727 = vmatmul.msk.bf16.gmra.mxu2 %vm1066_vm6, %v1673_v61  ;;  %v3495_v61 = vld [vmem:[%s3259_s14 + $0x88] sm:$0xf]  ;;  %v855_v23 = vrot.slane %v853_v8, 5 }
  0xef   : > { %v859_v9 = vshll.u32 %v3495_v61, 16  ;;  %v863_v15 = vshrl.u32 %v3495_v61, 16 }
  0xf1   : > { %v1774_v18 = vpop.f32.mrf.mxu2  ;;  %v861_v27 = vrot.slane %v859_v9, 5  ;;  %v865_v28 = vrot.slane %v863_v15, 4 }
  0xf2   : > { %v1854_v19 = vadd.f32 %v1774_v18, %v1378_v6  ;;  %v1126_v21 = vpop.f32.mrf.mxu0  ;;  %v1379_v22 = vpop.f32.mrf.mxu1  ;;  %v850_v6 = vshrl.u32 %v544_v60, 16  ;;  %v1002_v18 = vunpack.c.l.b16 %v838_v1 }
  0xf3   : > { %v1380_v38 = vadd.f32 %v1379_v22, %v1126_v21  ;;  %v1653_v21 = vunpack.c.l.b16 %v1581_v5  ;;  %v866_v41 = vor.u32 %v865_v28, %v861_v27  ;;  %v1469_v28 = vld [vmem:[%s3259_s14 + $0x90] sm:$0xe] }
  0xf4   : > { %v1890_v34 = vmul.f32 %v3469_v20, %v1854_v19  ;;  %v1003_v19 = vunpack.c.l.b16 %v848_v2  ;;  %v852_v22 = vrot.slane %v850_v6, 4 }
  0xf5   : > { %v1675_v40 = vpack.c.b16 %v1654_v25, %v1653_v21  ;;  %v867_v51 = vrot.slane %v866_v41, 4  ;;  %v2785_v25 = vld [vmem:[%s3259_s14 + $0x84] sm:$0xff] }
  0xf6   : > { %v1926_v45 = vadd.f32 %v3482_v35, %v1890_v34  ;;  %v1024_v31 = vpack.c.b16 %v1003_v19, %v1002_v18  ;;  %v856_v33 = vor.u32 %v855_v23, %v852_v22  ;;  %v869_v34 = vshll.u32 %v577_v26, 16  ;;  %v578_v19 = vld [vmem:[%s3259_s14 + $0x98] sm:$0x1] }
  0xf8   : > { %v1958_v59 = vmul.f32 0.1, %v1926_v45 }
  0xf9   : > { %v1776_v42 = vpop.f32.mrf.mxu2 }
  0xfa   : > { %v1855_v46 = vadd.f32 %v1776_v42, %v1380_v38  ;;  %v1129_v47 = vpop.f32.mrf.mxu0  ;;  %v1382_v48 = vpop.f32.mrf.mxu1  ;;  %v1990_v13 = vmax.f32 %v1926_v45, %v1958_v59  ;;  %v1587_v42 = vrot.slane %v3495_v61, 5  ;;  %v857_v45 = vrot.slane %v856_v33, 4 }
  0xfb   : > { %v1383_v57 = vadd.f32 %v1382_v48, %v1129_v47  ;;  %v546_v47 = vld [vmem:[%s3259_s14 + $0x90] sm:$0xf] }
  0xfc   : > { %v1891_v52 = vmul.f32 %v3469_v20, %v1855_v46  ;;  %v871_v46 = vrot.slane %v869_v34, 5  ;;  %v1589_v54 = vrot.slane %v1587_v42, 4  ;;  %v862_v60 = vsel %vm3281_vm5, %v857_v45, %v861_v27  ;;  %v3545_v45 = vld [vmem:[%s3259_s14 + $0xa0] sm:$0xf] }
  0xfd   : > { %2556 = vmatmul.msk.bf16.gmra.mxu0 %vm1066_vm6, %v1023_v43  ;;  %2660 = vmatmul.msk.bf16.gmra.mxu1 %vm1066_vm6, %v2783_v44  ;;  %v1468_v44 = vld [vmem:[%s3259_s14 + $0x84] sm:$0xe]  ;;  %v893_v27 = vshll.u32 %v578_v19, 16 }
  0xfe   : > { %2728 = vmatmul.msk.bf16.gmra.mxu2 %vm1066_vm6, %v1674_v49  ;;  %v1927_v58 = vadd.f32 %v3482_v35, %v1891_v52  ;;  %v3520_v52 = vld [vmem:[%s3259_s14 + $0x94] sm:$0xf]  ;;  %v2678_v53 = vrot.slane %v1468_v44, 9  ;;  %v872_v5 = vsel %vm3281_vm5, %v867_v51, %v871_v46  ;;  %v1591_v8 = vsel %vm3272_vm4, %v1589_v54, %v1590_v55  ;;  %v548_v44 = vld [vmem:[%s3259_s14 + $0x9c] sm:$0xf] }
  0xff   : > { %v883_v61 = vshll.u32 %v3520_v52, 16  ;;  %v887_v62 = vshrl.u32 %v3520_v52, 16  ;;  %v1656_v18 = vunpack.c.l.b16 %v1591_v8  ;;  %v1594_v34 = vrot.slane %v3520_v52, 5 }
 0x100   : > { %v1959_v0 = vmul.f32 0.1, %v1927_v58  ;;  %v1588_v6 = vsel %vm3272_vm4, %v2678_v53, %v1587_v42  ;;  %v898_v53 = vshrl.u32 %v548_v44, 16  ;;  %v901_v54 = vshll.u32 %v548_v44, 16 }
 0x101   : > { %v1779_v3 = vpop.f32.mrf.mxu2  ;;  %v889_v15 = vrot.slane %v887_v62, 4  ;;  %v1596_v46 = vrot.slane %v1594_v34, 4  ;;  %v907_v55 = vshll.u32 %v3545_v45, 16 }
 0x102   : > { %v1856_v10 = vadd.f32 %v1779_v3, %v1383_v57  ;;  %v1131_v11 = vpop.f32.mrf.mxu0  ;;  %v1384_v12 = vpop.f32.mrf.mxu1  ;;  %v1991_v14 = vmax.f32 %v1927_v58, %v1959_v0  ;;  %v874_v57 = vshrl.u32 %v546_v47, 16  ;;  %v877_v58 = vshll.u32 %v546_v47, 16 }
 0x103   : > { %v1385_v29 = vadd.f32 %v1384_v12, %v1131_v11  ;;  %v1004_v12 = vunpack.c.l.b16 %v862_v60  ;;  %v1597_v47 = vrot.slane %v578_v19, 5 }
 0x104   : > { %v2022_v17 = vpack.c.bf16 %v1991_v14, %v1990_v13  ;;  %v1892_v24 = vmul.f32 %v3469_v20, %v1856_v10  ;;  %v876_v10 = vrot.slane %v874_v57, 4  ;;  %v879_v11 = vrot.slane %v877_v58, 5 }
 0x105   : > { %v1005_v13 = vunpack.c.l.b16 %v872_v5  ;;  %v885_v14 = vrot.slane %v883_v61, 5  ;;  %v911_v61 = vshrl.u32 %v3545_v45, 16  ;;  %v1598_v62 = vsel %vm3272_vm4, %v1596_v46, %v1597_v47 }
 0x106   : > { %2110 = vmatmul.bf16.vlgmr.msra.gmra.mxu3 %v2022_v17  ;;  %v1928_v36 = vadd.f32 %v3482_v35, %v1892_v24  ;;  %v1655_v17 = vunpack.c.l.b16 %v1588_v6  ;;  %v880_v22 = vor.u32 %v879_v11, %v876_v10  ;;  %v903_v5 = vrot.slane %v901_v54, 5 }
 0x107   : > { %v1025_v24 = vpack.c.b16 %v1005_v13, %v1004_v12  ;;  %v890_v26 = vor.u32 %v889_v15, %v885_v14  ;;  %v1658_v8 = vunpack.c.l.b16 %v1598_v62  ;;  %v909_v10 = vrot.slane %v907_v55, 5  ;;  %v2786_v15 = vld [vmem:[%s3259_s14 + $0x90] sm:$0xff] }
 0x108   : > { %v1960_v50 = vmul.f32 0.1, %v1928_v36  ;;  %v1676_v33 = vpack.c.b16 %v1656_v18, %v1655_v17  ;;  %v913_v11 = vrot.slane %v911_v61, 4 }
 0x109   : > { %v1781_v30 = vpop.f32.mrf.mxu2 }
 0x10a   : > { %v1857_v37 = vadd.f32 %v1781_v30, %v1385_v29  ;;  %v1134_v38 = vpop.f32.mrf.mxu0  ;;  %v1387_v39 = vpop.f32.mrf.mxu1  ;;  %v1992_v2 = vmax.f32 %v1928_v36, %v1960_v50 }
 0x10b   : > { %v1388_v48 = vadd.f32 %v1387_v39, %v1134_v38  ;;  %v2679_v38 = vrot.slane %v1469_v28, 9  ;;  %v891_v39 = vrot.slane %v890_v26, 4 }
 0x10c   : > { %v1893_v43 = vmul.f32 %v3469_v20, %v1857_v37  ;;  %v881_v37 = vrot.slane %v880_v22, 4 }
 0x10d   : > { %2557 = vmatmul.msk.bf16.gmra.mxu0 %vm1066_vm6, %v1024_v31  ;;  %2661 = vmatmul.msk.bf16.gmra.mxu1 %vm1066_vm6, %v2784_v32  ;;  %v1595_v50 = vsel %vm3272_vm4, %v2679_v38, %v1594_v34 }
 0x10e   : > { %2729 = vmatmul.msk.bf16.gmra.mxu2 %vm1066_vm6, %v1675_v40  ;;  %v1929_v49 = vadd.f32 %v3482_v35, %v1893_v43  ;;  %v895_v40 = vrot.slane %v893_v27, 5  ;;  %v1470_v27 = vld [vmem:[%s3259_s14 + $0x9c] sm:$0xe] }
 0x110   : > { %v1961_v56 = vmul.f32 0.1, %v1929_v49  ;;  %v896_v52 = vsel %vm3281_vm5, %v891_v39, %v895_v40 }
 0x111   : > { %v1784_v59 = vpop.f32.mrf.mxu2 }
 0x112   : > { %v1858_v63 = vadd.f32 %v1784_v59, %v1388_v48  ;;  %v1136_v0 = vpop.f32.mrf.mxu0  ;;  %v1389_v1 = vpop.f32.mrf.mxu1  ;;  %v1993_v3 = vmax.f32 %v1929_v49, %v1961_v56  ;;  %v886_v49 = vsel %vm3281_vm5, %v881_v37, %v885_v14  ;;  %v2680_v37 = vrot.slane %v1470_v27, 9  ;;  %v552_v27 = vld [vmem:[%s3259_s14 + $0xb4] sm:$0xf] }
 0x113   : > { %v1390_v21 = vadd.f32 %v1389_v1, %v1136_v0  ;;  %v1006_v0 = vunpack.c.l.b16 %v886_v49  ;;  %v1007_v1 = vunpack.c.l.b16 %v896_v52 }
 0x114   : > { %v2023_v9 = vpack.c.bf16 %v1993_v3, %v1992_v2  ;;  %v1894_v16 = vmul.f32 %v3469_v20, %v1858_v63  ;;  %v1657_v2 = vunpack.c.l.b16 %v1595_v50  ;;  %v900_v3 = vrot.slane %v898_v53, 4 }
 0x115   : > { %v1026_v14 = vpack.c.b16 %v1007_v1, %v1006_v0  ;;  %v580_v1 = vld [vmem:[%s3259_s14 + $0xb0] sm:$0x1] }
 0x116   : > { %2115 = vmatmul.bf16.gmra.mxu3 %v2023_v9  ;;  %v1930_v29 = vadd.f32 %v3482_v35, %v1894_v16  ;;  %v579_v9 = vld [vmem:[%s3259_s14 + $0xa4] sm:$0x1]  ;;  %v904_v16 = vor.u32 %v903_v5, %v900_v3 }
 0x117   : > { %v917_v17 = vshll.u32 %v579_v9, 16  ;;  %v1604_v39 = vrot.slane %v579_v9, 5 }
 0x118   : > { %v1962_v43 = vmul.f32 0.1, %v1930_v29  ;;  %v905_v28 = vrot.slane %v904_v16, 4 }
 0x119   : > { %v1786_v23 = vpop.f32.mrf.mxu2 }
 0x11a   : > { %v1859_v30 = vadd.f32 %v1786_v23, %v1390_v21  ;;  %v1139_v31 = vpop.f32.mrf.mxu0  ;;  %v1392_v32 = vpop.f32.mrf.mxu1  ;;  %v1994_v59 = vmax.f32 %v1930_v29, %v1962_v43  ;;  %v1677_v23 = vpack.c.b16 %v1658_v8, %v1657_v2  ;;  %v919_v29 = vrot.slane %v917_v17, 5  ;;  %v2787_v8 = vld [vmem:[%s3259_s14 + $0x9c] sm:$0xff] }
 0x11b   : > { %v1393_v41 = vadd.f32 %v1392_v32, %v1139_v31  ;;  %v910_v44 = vsel %vm3281_vm5, %v905_v28, %v909_v10  ;;  %v3595_v28 = vld [vmem:[%s3259_s14 + $0xb8] sm:$0xf] }
 0x11c   : > { %v1895_v36 = vmul.f32 %v3469_v20, %v1859_v30  ;;  %v550_v30 = vld [vmem:[%s3259_s14 + $0xa8] sm:$0xf] }
 0x11d   : > { %2558 = vmatmul.msk.bf16.gmra.mxu0 %vm1066_vm6, %v1025_v24  ;;  %2662 = vmatmul.msk.bf16.gmra.mxu1 %vm1066_vm6, %v2785_v25  ;;  %v914_v24 = vor.u32 %v913_v11, %v909_v10  ;;  %v1601_v25 = vrot.slane %v3545_v45, 5  ;;  %v941_v10 = vshll.u32 %v580_v1, 16  ;;  %v1471_v11 = vld [vmem:[%s3259_s14 + $0xa8] sm:$0xe] }
 0x11e   : > { %2730 = vmatmul.msk.bf16.gmra.mxu2 %vm1066_vm6, %v1676_v33  ;;  %v1931_v42 = vadd.f32 %v3482_v35, %v1895_v36  ;;  %v3570_v36 = vld [vmem:[%s3259_s14 + $0xac] sm:$0xf] }
 0x11f   : > { %v915_v34 = vrot.slane %v914_v24, 4  ;;  %v1603_v38 = vrot.slane %v1601_v25, 4  ;;  %v931_v45 = vshll.u32 %v3570_v36, 16  ;;  %v935_v46 = vshrl.u32 %v3570_v36, 16 }
 0x120   : > { %v1963_v48 = vmul.f32 0.1, %v1931_v42  ;;  %v1602_v53 = vsel %vm3272_vm4, %v2680_v37, %v1601_v25  ;;  %v1608_v17 = vrot.slane %v3570_v36, 5  ;;  %v946_v37 = vshrl.u32 %v552_v27, 16 }
 0x121   : > { %v1789_v51 = vpop.f32.mrf.mxu2  ;;  %v920_v52 = vsel %vm3281_vm5, %v915_v34, %v919_v29  ;;  %v1605_v54 = vsel %vm3272_vm4, %v1603_v38, %v1604_v39  ;;  %v937_v61 = vrot.slane %v935_v46, 4  ;;  %v949_v38 = vshll.u32 %v552_v27, 16 }
 0x122   : > { %v1860_v56 = vadd.f32 %v1789_v51, %v1393_v41  ;;  %v1141_v57 = vpop.f32.mrf.mxu0  ;;  %v1394_v58 = vpop.f32.mrf.mxu1  ;;  %v1995_v60 = vmax.f32 %v1931_v42, %v1963_v48  ;;  %v922_v41 = vshrl.u32 %v550_v30, 16  ;;  %v925_v42 = vshll.u32 %v550_v30, 16 }
 0x123   : > { %v1395_v12 = vadd.f32 %v1394_v58, %v1141_v57  ;;  %v1008_v58 = vunpack.c.l.b16 %v910_v44  ;;  %v1660_v0 = vunpack.c.l.b16 %v1605_v54  ;;  %v1610_v29 = vrot.slane %v1608_v17, 4 }
 0x124   : > { %v2024_v63 = vpack.c.bf16 %v1995_v60, %v1994_v59  ;;  %v1896_v6 = vmul.f32 %v3469_v20, %v1860_v56  ;;  %v924_v56 = vrot.slane %v922_v41, 4  ;;  %v927_v57 = vrot.slane %v925_v42, 5 }
 0x125   : > { %v1009_v59 = vunpack.c.l.b16 %v920_v52  ;;  %v933_v60 = vrot.slane %v931_v45, 5  ;;  %v1611_v30 = vrot.slane %v580_v1, 5  ;;  %v955_v39 = vshll.u32 %v3595_v28, 16 }
 0x126   : > { %2120 = vmatmul.bf16.gmra.mxu3 %v2024_v63  ;;  %v1932_v18 = vadd.f32 %v3482_v35, %v1896_v6  ;;  %v1659_v63 = vunpack.c.l.b16 %v1602_v53  ;;  %v928_v3 = vor.u32 %v927_v57, %v924_v56  ;;  %v959_v45 = vshrl.u32 %v3595_v28, 16 }
 0x127   : > { %v1027_v6 = vpack.c.b16 %v1009_v59, %v1008_v58  ;;  %v938_v9 = vor.u32 %v937_v61, %v933_v60  ;;  %v1612_v46 = vsel %vm3272_vm4, %v1610_v29, %v1611_v30  ;;  %v951_v52 = vrot.slane %v949_v38, 5  ;;  %v2788_v61 = vld [vmem:[%s3259_s14 + $0xa8] sm:$0xff] }
 0x128   : > { %v1964_v33 = vmul.f32 0.1, %v1932_v18  ;;  %v1678_v16 = vpack.c.b16 %v1660_v0, %v1659_v63  ;;  %v1662_v54 = vunpack.c.l.b16 %v1612_v46  ;;  %v957_v56 = vrot.slane %v955_v39, 5 }
 0x129   : > { %v1791_v13 = vpop.f32.mrf.mxu2  ;;  %v961_v57 = vrot.slane %v959_v45, 4 }
 0x12a   : > { %v1861_v19 = vadd.f32 %v1791_v13, %v1395_v12  ;;  %v1144_v21 = vpop.f32.mrf.mxu0  ;;  %v1397_v22 = vpop.f32.mrf.mxu1  ;;  %v1996_v50 = vmax.f32 %v1932_v18, %v1964_v33 }
 0x12b   : > { %v1398_v31 = vadd.f32 %v1397_v22, %v1144_v21  ;;  %v2681_v21 = vrot.slane %v1471_v11, 9  ;;  %v939_v22 = vrot.slane %v938_v9, 4 }
 0x12c   : > { %v1897_v26 = vmul.f32 %v3469_v20, %v1861_v19  ;;  %v929_v19 = vrot.slane %v928_v3, 4 }
 0x12d   : > { %2559 = vmatmul.msk.bf16.gmra.mxu0 %vm1066_vm6, %v1026_v14  ;;  %2663 = vmatmul.msk.bf16.gmra.mxu1 %vm1066_vm6, %v2786_v15  ;;  %v1609_v33 = vsel %vm3272_vm4, %v2681_v21, %v1608_v17 }
 0x12e   : > { %2731 = vmatmul.msk.bf16.gmra.mxu2 %vm1066_vm6, %v1677_v23  ;;  %v1933_v32 = vadd.f32 %v3482_v35, %v1897_v26  ;;  %v943_v23 = vrot.slane %v941_v10, 5  ;;  %v1472_v10 = vld [vmem:[%s3259_s14 + $0xb4] sm:$0xe] }
 0x12f   : > { %v2682_v17 = vrot.slane %v1472_v10, 9 }
 0x130   : > { %v1965_v40 = vmul.f32 0.1, %v1933_v32  ;;  %v944_v36 = vsel %vm3281_vm5, %v939_v22, %v943_v23 }
 0x131   : > { %v1794_v43 = vpop.f32.mrf.mxu2 }
 0x132   : > { %v1862_v47 = vadd.f32 %v1794_v43, %v1398_v31  ;;  %v1146_v48 = vpop.f32.mrf.mxu0  ;;  %v1399_v49 = vpop.f32.mrf.mxu1  ;;  %v1997_v51 = vmax.f32 %v1933_v32, %v1965_v40  ;;  %v934_v32 = vsel %vm3281_vm5, %v929_v19, %v933_v60 }
 0x133   : > { %v1400_v2 = vadd.f32 %v1399_v49, %v1146_v48  ;;  %v1010_v48 = vunpack.c.l.b16 %v934_v32  ;;  %v1011_v49 = vunpack.c.l.b16 %v944_v36 }
 0x134   : > { %v2025_v55 = vpack.c.bf16 %v1997_v51, %v1996_v50  ;;  %v1898_v62 = vmul.f32 %v3469_v20, %v1862_v47  ;;  %v1661_v50 = vunpack.c.l.b16 %v1609_v33  ;;  %v948_v51 = vrot.slane %v946_v37, 4 }
 0x135   : > { %v1028_v60 = vpack.c.b16 %v1011_v49, %v1010_v48 }
 0x136   : > { %2125 = vmatmul.bf16.gmra.mxu3 %v2025_v55  ;;  %v1934_v12 = vadd.f32 %v3482_v35, %v1898_v62  ;;  %v581_v55 = vld [vmem:[%s3259_s14 + $0xbc] sm:$0x1]  ;;  %v952_v62 = vor.u32 %v951_v52, %v948_v51 }
 0x137   : > { %v965_v63 = vshll.u32 %v581_v55, 16  ;;  %v1618_v19 = vrot.slane %v581_v55, 5 }
 0x138   : > { %v1966_v26 = vmul.f32 0.1, %v1934_v12  ;;  %v953_v11 = vrot.slane %v952_v62, 4 }
 0x139   : > { %v1796_v5 = vpop.f32.mrf.mxu2 }
 0x13a   : > { %v1863_v13 = vadd.f32 %v1796_v5, %v1400_v2  ;;  %v1149_v14 = vpop.f32.mrf.mxu0  ;;  %v1402_v15 = vpop.f32.mrf.mxu1  ;;  %v1998_v43 = vmax.f32 %v1934_v12, %v1966_v26  ;;  %v1679_v5 = vpack.c.b16 %v1662_v54, %v1661_v50  ;;  %v967_v12 = vrot.slane %v965_v63, 5 }
 0x13b   : > { %v1403_v25 = vadd.f32 %v1402_v15, %v1149_v14  ;;  %v958_v23 = vsel %vm3281_vm5, %v953_v11, %v957_v56 }
 0x13c   : > { %v1899_v18 = vmul.f32 %v3469_v20, %v1863_v13  ;;  %v1012_v33 = vunpack.c.l.b16 %v958_v23 }
 0x13d   : > { %2560 = vmatmul.msk.bf16.gmra.mxu0 %vm1066_vm6, %v1027_v6  ;;  %2664 = vmatmul.msk.bf16.gmra.mxu1 %vm1066_vm6, %v2787_v8  ;;  %v962_v6 = vor.u32 %v961_v57, %v957_v56  ;;  %v1615_v8 = vrot.slane %v3595_v28, 5 }
 0x13e   : > { %v1935_v24 = vadd.f32 %v3482_v35, %v1899_v18  ;;  %2732 = vmatmul.msk.bf16.gmra.mxu2 %vm1066_vm6, %v1678_v16 }
 0x13f   : > { %v963_v16 = vrot.slane %v962_v6, 4  ;;  %v1617_v18 = vrot.slane %v1615_v8, 4  ;;  %v1616_v30 = vsel %vm3272_vm4, %v2682_v17, %v1615_v8 }
 0x140   : > { %v1967_v31 = vmul.f32 0.1, %v1935_v24  ;;  %v1663_v37 = vunpack.c.l.b16 %v1616_v30 }
 0x141   : > { %v1799_v34 = vpop.f32.mrf.mxu2  ;;  %v968_v29 = vsel %vm3281_vm5, %v963_v16, %v967_v12 }
 0x142   : > { %v1864_v40 = vadd.f32 %v1799_v34, %v1403_v25  ;;  %v1151_v41 = vpop.f32.mrf.mxu0  ;;  %v1404_v42 = vpop.f32.mrf.mxu1  ;;  %v1999_v44 = vmax.f32 %v1935_v24, %v1967_v31  ;;  %v1619_v31 = vsel %vm3272_vm4, %v1617_v18, %v1618_v19  ;;  %v1013_v34 = vunpack.c.l.b16 %v968_v29 }
 0x143   : > { %v1405_v58 = vadd.f32 %v1404_v42, %v1151_v41  ;;  %v1664_v38 = vunpack.c.l.b16 %v1619_v31  ;;  %v2789_v42 = vld [vmem:[%s3259_s14 + $0xb4] sm:$0xff] }
 0x144   : > { %v2026_v47 = vpack.c.bf16 %v1999_v44, %v1998_v43  ;;  %v1900_v53 = vmul.f32 %v3469_v20, %v1864_v40  ;;  %v1029_v41 = vpack.c.b16 %v1013_v34, %v1012_v33 }
 0x145   : > { %v1680_v46 = vpack.c.b16 %v1664_v38, %v1663_v37 }
 0x146   : > { %2130 = vmatmul.bf16.gmra.mxu3 %v2026_v47  ;;  %v1936_v0 = vadd.f32 %v3482_v35, %v1900_v53 }
 0x148   : > { %v1968_v15 = vmul.f32 0.1, %v1936_v0 }
 0x149   : > { %v1801_v59 = vpop.f32.mrf.mxu2 }
 0x14a   : > { %v1865_v1 = vadd.f32 %v1801_v59, %v1405_v58  ;;  %v1154_v2 = vpop.f32.mrf.mxu0  ;;  %v1407_v3 = vpop.f32.mrf.mxu1  ;;  %v2000_v27 = vmax.f32 %v1936_v0, %v1968_v15 }
 0x14b   : > { %v1408_v14 = vadd.f32 %v1407_v3, %v1154_v2 }
 0x14c   : > { %v1901_v9 = vmul.f32 %v3469_v20, %v1865_v1 }
 0x14d   : > { %2561 = vmatmul.msk.bf16.gmra.mxu0 %vm1066_vm6, %v1028_v60  ;;  %2665 = vmatmul.msk.bf16.gmra.mxu1 %vm1066_vm6, %v2788_v61 }
 0x14e   : > { %v1937_v13 = vadd.f32 %v3482_v35, %v1901_v9  ;;  %2733 = vmatmul.msk.bf16.gmra.mxu2 %vm1066_vm6, %v1679_v5 }
 0x150   : > { %v1969_v21 = vmul.f32 0.1, %v1937_v13 }
 0x151   : > { %v1804_v22 = vpop.f32.mrf.mxu2 }
 0x152   : > { %v1866_v24 = vadd.f32 %v1804_v22, %v1408_v14  ;;  %v1156_v25 = vpop.f32.mrf.mxu0  ;;  %v1409_v26 = vpop.f32.mrf.mxu1  ;;  %v2001_v28 = vmax.f32 %v1937_v13, %v1969_v21 }
 0x153   : > { %v1410_v39 = vadd.f32 %v1409_v26, %v1156_v25 }
 0x154   : > { %v2027_v32 = vpack.c.bf16 %v2001_v28, %v2000_v27  ;;  %v1902_v36 = vmul.f32 %v3469_v20, %v1866_v24 }
 0x156   : > { %2135 = vmatmul.bf16.gmra.mxu3 %v2027_v32  ;;  %v1938_v7 = vadd.f32 %v3482_v35, %v1902_v36 }
 0x158   : > { %v1970_v49 = vmul.f32 0.1, %v1938_v7 }
 0x159   : > { %v1806_v40 = vpop.f32.mrf.mxu2 }
 0x15a   : > { %v1867_v43 = vadd.f32 %v1806_v40, %v1410_v39  ;;  %v1159_v44 = vpop.f32.mrf.mxu0  ;;  %v1412_v45 = vpop.f32.mrf.mxu1  ;;  %v2002_v55 = vmax.f32 %v1938_v7, %v1970_v49 }
 0x15b   : > { %v1413_v48 = vadd.f32 %v1412_v45, %v1159_v44 }
 0x15c   : > { %v1903_v4 = vmul.f32 %v3469_v20, %v1867_v43 }
 0x15d   : > { %2562 = vmatmul.msk.bf16.gmra.mxu0 %vm1066_vm6, %v1029_v41  ;;  %2666 = vmatmul.msk.bf16.gmra.mxu1 %vm1066_vm6, %v2789_v42 }
 0x15e   : > { %v1939_v47 = vadd.f32 %v3482_v35, %v1903_v4  ;;  %2734 = vmatmul.msk.bf16.gmra.mxu2 %vm1066_vm6, %v1680_v46 }
 0x160   : > { %v1971_v50 = vmul.f32 0.1, %v1939_v47 }
 0x161   : > { %v1809_v51 = vpop.f32.mrf.mxu2 }
 0x162   : > { %v1868_v52 = vadd.f32 %v1809_v51, %v1413_v48  ;;  %v1161_v53 = vpop.f32.mrf.mxu0  ;;  %v1414_v54 = vpop.f32.mrf.mxu1  ;;  %v2003_v56 = vmax.f32 %v1939_v47, %v1971_v50 }
 0x163   : > { %v1415_v59 = vadd.f32 %v1414_v54, %v1161_v53 }
 0x164   : > { %v2028_v57 = vpack.c.bf16 %v2003_v56, %v2002_v55  ;;  %v1904_v58 = vmul.f32 %v3469_v20, %v1868_v52 }
 0x166   : > { %2140 = vmatmul.bf16.gmra.mxu3 %v2028_v57  ;;  %v1940_v61 = vadd.f32 %v3482_v35, %v1904_v58 }
 0x168   : > { %v1972_v5 = vmul.f32 0.1, %v1940_v61 }
 0x169   : > { %v1811_v60 = vpop.f32.mrf.mxu2 }
 0x16a   : > { %v1869_v62 = vadd.f32 %v1811_v60, %v1415_v59  ;;  %v1164_v63 = vpop.f32.mrf.mxu0  ;;  %v1417_v0 = vpop.f32.mrf.mxu1  ;;  %v2004_v12 = vmax.f32 %v1940_v61, %v1972_v5 }
 0x16b   : > { %v1418_v3 = vadd.f32 %v1417_v0, %v1164_v63 }
 0x16c   : > { %v1905_v1 = vmul.f32 %v3469_v20, %v1869_v62 }
 0x16e   : > { %v1941_v2 = vadd.f32 %v3482_v35, %v1905_v1 }
 0x170   : > { %v1973_v6 = vmul.f32 0.1, %v1941_v2 }
 0x171   : > { %v1814_v8 = vpop.f32.mrf.mxu2 }
 0x172   : > { %v1870_v9 = vadd.f32 %v1814_v8, %v1418_v3  ;;  %v1166_v10 = vpop.f32.mrf.mxu0  ;;  %v1419_v11 = vpop.f32.mrf.mxu1  ;;  %v2005_v13 = vmax.f32 %v1941_v2, %v1973_v6 }
 0x173   : > { %v1420_v16 = vadd.f32 %v1419_v11, %v1166_v10 }
 0x174   : > { %v2029_v14 = vpack.c.bf16 %v2005_v13, %v2004_v12  ;;  %v1906_v15 = vmul.f32 %v3469_v20, %v1870_v9 }
 0x176   : > { %2145 = vmatmul.bf16.gmra.mxu3 %v2029_v14  ;;  %v1942_v18 = vadd.f32 %v3482_v35, %v1906_v15 }
 0x178   : > { %v1974_v26 = vmul.f32 0.1, %v1942_v18 }
 0x179   : > { %v1816_v17 = vpop.f32.mrf.mxu2 }
 0x17a   : > { %v1871_v19 = vadd.f32 %v1816_v17, %v1420_v16  ;;  %v1169_v21 = vpop.f32.mrf.mxu0  ;;  %v1422_v22 = vpop.f32.mrf.mxu1  ;;  %v2006_v32 = vmax.f32 %v1942_v18, %v1974_v26 }
 0x17b   : > { %v1423_v25 = vadd.f32 %v1422_v22, %v1169_v21 }
 0x17c   : > { %v1907_v23 = vmul.f32 %v3469_v20, %v1871_v19 }
 0x17e   : > { %v1943_v24 = vadd.f32 %v3482_v35, %v1907_v23 }
 0x180   : > { %v1975_v27 = vmul.f32 0.1, %v1943_v24 }
 0x181   : > { %v1819_v28 = vpop.f32.mrf.mxu2 }
 0x182   : > { %v1872_v29 = vadd.f32 %v1819_v28, %v1423_v25  ;;  %v1171_v30 = vpop.f32.mrf.mxu0  ;;  %v1424_v31 = vpop.f32.mrf.mxu1  ;;  %v2007_v33 = vmax.f32 %v1943_v24, %v1975_v27 }
 0x183   : > { %v1425_v37 = vadd.f32 %v1424_v31, %v1171_v30 }
 0x184   : > { %v2030_v34 = vpack.c.bf16 %v2007_v33, %v2006_v32  ;;  %v1908_v36 = vmul.f32 %v3469_v20, %v1872_v29 }
 0x186   : > { %2150 = vmatmul.bf16.gmra.mxu3 %v2030_v34  ;;  %v1944_v40 = vadd.f32 %v3482_v35, %v1908_v36 }
 0x188   : > { %v1976_v46 = vmul.f32 0.1, %v1944_v40 }
 0x189   : > { %v1821_v38 = vpop.f32.mrf.mxu2  ;;  %v3643_v39 = vpop.f32.mrf.mxu3 }
 0x18a   : > { %v1873_v41 = vadd.f32 %v1821_v38, %v1425_v37  ;;  %v1174_v42 = vpop.f32.mrf.mxu0  ;;  %v1427_v7 = vpop.f32.mrf.mxu1  ;;  %v2008_v52 = vmax.f32 %v1944_v40, %v1976_v46 }
 0x18b   : > { %v1428_v45 = vadd.f32 %v1427_v7, %v1174_v42 }
 0x18c   : > { %v1909_v43 = vmul.f32 %v3469_v20, %v1873_v41 }
 0x18e   : > { %v1945_v44 = vadd.f32 %v3482_v35, %v1909_v43 }
 0x190   : > { %v1977_v4 = vmul.f32 0.1, %v1945_v44 }
 0x191   : > { %v1824_v47 = vpop.f32.mrf.mxu2  ;;  %v3648_v48 = vpop.f32.mrf.mxu3 }
 0x192   : > { %v1874_v49 = vadd.f32 %v1824_v47, %v1428_v45  ;;  %v1176_v50 = vpop.f32.mrf.mxu0  ;;  %v1429_v51 = vpop.f32.mrf.mxu1  ;;  %v2009_v53 = vmax.f32 %v1945_v44, %v1977_v4 }
 0x193   : > { %v1430_v56 = vadd.f32 %v1429_v51, %v1176_v50 }
 0x194   : > { %v2031_v54 = vpack.c.bf16 %v2009_v53, %v2008_v52  ;;  %v1910_v55 = vmul.f32 %v3469_v20, %v1874_v49 }
 0x196   : > { %2155 = vmatmul.bf16.gmra.mxu3 %v2031_v54  ;;  %v1946_v59 = vadd.f32 %v3482_v35, %v1910_v55 }
 0x198   : > { %v1978_v2 = vmul.f32 0.1, %v1946_v59 }
 0x199   : > { %v1826_v57 = vpop.f32.mrf.mxu2  ;;  %v3651_v58 = vpop.f32.mrf.mxu3 }
 0x19a   : > { %v1875_v60 = vadd.f32 %v1826_v57, %v1430_v56  ;;  %v1179_v61 = vpop.f32.mrf.mxu0  ;;  %v1432_v62 = vpop.f32.mrf.mxu1  ;;  %v2010_v11 = vmax.f32 %v1946_v59, %v1978_v2 }
 0x19b   : > { %v1433_v1 = vadd.f32 %v1432_v62, %v1179_v61 }
 0x19c   : > { %v1911_v63 = vmul.f32 %v3469_v20, %v1875_v60 }
 0x19e   : > { %v1947_v0 = vadd.f32 %v3482_v35, %v1911_v63 }
 0x1a0   : > { %v1979_v3 = vmul.f32 0.1, %v1947_v0 }
 0x1a1   : > { %v1829_v5 = vpop.f32.mrf.mxu2  ;;  %v3656_v6 = vpop.f32.mrf.mxu3 }
 0x1a2   : > { %v1876_v8 = vadd.f32 %v1829_v5, %v1433_v1  ;;  %v1181_v9 = vpop.f32.mrf.mxu0  ;;  %v1434_v10 = vpop.f32.mrf.mxu1  ;;  %v2011_v12 = vmax.f32 %v1947_v0, %v1979_v3 }
 0x1a3   : > { %v1435_v15 = vadd.f32 %v1434_v10, %v1181_v9 }
 0x1a4   : > { %v2032_v13 = vpack.c.bf16 %v2011_v12, %v2010_v11  ;;  %v1912_v14 = vmul.f32 %v3469_v20, %v1876_v8 }
 0x1a6   : > { %2160 = vmatmul.bf16.gmra.mxu3 %v2032_v13  ;;  %v1948_v18 = vadd.f32 %v3482_v35, %v1912_v14 }
 0x1a8   : > { %v1980_v26 = vmul.f32 0.1, %v1948_v18 }
 0x1a9   : > { %v1831_v16 = vpop.f32.mrf.mxu2  ;;  %v3659_v17 = vpop.f32.mrf.mxu3 }
 0x1aa   : > { %v1877_v19 = vadd.f32 %v1831_v16, %v1435_v15  ;;  %v1184_v21 = vpop.f32.mrf.mxu0  ;;  %v1437_v22 = vpop.f32.mrf.mxu1  ;;  %v2012_v33 = vmax.f32 %v1948_v18, %v1980_v26 }
 0x1ab   : > { %v1438_v25 = vadd.f32 %v1437_v22, %v1184_v21  ;;  %v2911_v21 = vld [vmem:[%s3315_s24] ss:$0 sm:$0xff] }
 0x1ac   : > { %v1913_v23 = vmul.f32 %v3469_v20, %v1877_v19 }
 0x1ae   : > { %v1949_v24 = vadd.f32 %v3482_v35, %v1913_v23 }
 0x1b0   : > { %v1981_v27 = vmul.f32 0.1, %v1949_v24 }
 0x1b1   : > { %v1834_v28 = vpop.f32.mrf.mxu2  ;;  %v3664_v29 = vpop.f32.mrf.mxu3 }
 0x1b2   : > { %v1878_v30 = vadd.f32 %v1834_v28, %v1438_v25  ;;  %v1186_v31 = vpop.f32.mrf.mxu0  ;;  %v1439_v32 = vpop.f32.mrf.mxu1  ;;  %v2013_v34 = vmax.f32 %v1949_v24, %v1981_v27 }
 0x1b3   : > { %v1440_v38 = vadd.f32 %v1439_v32, %v1186_v31  ;;  %v2912_v32 = vld [vmem:[%s3320_s20] ss:$0 sm:$0xff]  ;;  %s3730_s20 = scalar_lea.vmem [#allocation3], %s3243_s11 }
 0x1b4   : > { %v2033_v36 = vpack.c.bf16 %v2013_v34, %v2012_v33  ;;  %v1914_v37 = vmul.f32 %v3469_v20, %v1878_v30 }
 0x1b6   : > { %2165 = vmatmul.bf16.gmra.mxu3 %v2033_v36  ;;  %v1950_v42 = vadd.f32 %v3482_v35, %v1914_v37 }
 0x1b8   : > { %v1982_v46 = vmul.f32 0.1, %v1950_v42 }
 0x1b9   : > { %v1836_v40 = vpop.f32.mrf.mxu2  ;;  %v3667_v41 = vpop.f32.mrf.mxu3 }
 0x1ba   : > { %v1879_v7 = vadd.f32 %v1836_v40, %v1440_v38  ;;  %v1189_v43 = vpop.f32.mrf.mxu0  ;;  %v1442_v44 = vpop.f32.mrf.mxu1  ;;  %v2014_v55 = vmax.f32 %v1950_v42, %v1982_v46 }
 0x1bb   : > { %v1443_v47 = vadd.f32 %v1442_v44, %v1189_v43 }
 0x1bc   : > { %v1915_v45 = vmul.f32 %v3469_v20, %v1879_v7 }
 0x1be   : > { %v1951_v4 = vadd.f32 %v3482_v35, %v1915_v45 }
 0x1c0   : > { %v1983_v49 = vmul.f32 0.1, %v1951_v4 }
 0x1c1   : > { %v1839_v50 = vpop.f32.mrf.mxu2  ;;  %v3672_v51 = vpop.f32.mrf.mxu3 }
 0x1c2   : > { %v1880_v52 = vadd.f32 %v1839_v50, %v1443_v47  ;;  %v1191_v53 = vpop.f32.mrf.mxu0  ;;  %v1444_v54 = vpop.f32.mrf.mxu1  ;;  %v2015_v56 = vmax.f32 %v1951_v4, %v1983_v49 }
 0x1c3   : > { %v1445_v60 = vadd.f32 %v1444_v54, %v1191_v53 }
 0x1c4   : > { %v2034_v57 = vpack.c.bf16 %v2015_v56, %v2014_v55  ;;  %v1916_v59 = vmul.f32 %v3469_v20, %v1880_v52 }
 0x1c6   : > { %2170 = vmatmul.bf16.gmra.mxu3 %v2034_v57  ;;  %v1952_v63 = vadd.f32 %v3482_v35, %v1916_v59 }
 0x1c8   : > { %v1984_v5 = vmul.f32 0.1, %v1952_v63 }
 0x1c9   : > { %v1841_v61 = vpop.f32.mrf.mxu2  ;;  %v3675_v62 = vpop.f32.mrf.mxu3 }
 0x1ca   : > { %v1881_v0 = vadd.f32 %v1841_v61, %v1445_v60  ;;  %v1194_v1 = vpop.f32.mrf.mxu0  ;;  %v1447_v2 = vpop.f32.mrf.mxu1  ;;  %v2016_v16 = vmax.f32 %v1952_v63, %v1984_v5 }
 0x1cb   : > { %v1448_v9 = vadd.f32 %v1447_v2, %v1194_v1 }
 0x1cc   : > { %v1917_v3 = vmul.f32 %v3469_v20, %v1881_v0 }
 0x1ce   : > { %v1953_v8 = vadd.f32 %v3482_v35, %v1917_v3 }
 0x1d0   : > { %v1985_v10 = vmul.f32 0.1, %v1953_v8 }
 0x1d1   : > { %v1844_v11 = vpop.f32.mrf.mxu2  ;;  %v3680_v12 = vpop.f32.mrf.mxu3 }
 0x1d2   : > { %v1882_v13 = vadd.f32 %v1844_v11, %v1448_v9  ;;  %v1196_v14 = vpop.f32.mrf.mxu0  ;;  %v1449_v15 = vpop.f32.mrf.mxu1  ;;  %v2017_v18 = vmax.f32 %v1953_v8, %v1985_v10 }
 0x1d3   : > { %v1450_v23 = vadd.f32 %v1449_v15, %v1196_v14 }
 0x1d4   : > { %v2035_v19 = vpack.c.bf16 %v2017_v18, %v2016_v16  ;;  %v1918_v22 = vmul.f32 %v2911_v21, %v1882_v13 }
 0x1d6   : > { %2175 = vmatmul.bf16.gmra.mxu3 %v2035_v19  ;;  %v1954_v25 = vadd.f32 %v3482_v35, %v1918_v22 }
 0x1d8   : > { %v1986_v31 = vmul.f32 0.1, %v1954_v25 }
 0x1d9   : > { %v1846_v20 = vpop.f32.mrf.mxu2  ;;  %v3683_v24 = vpop.f32.mrf.mxu3 }
 0x1da   : > { %v1883_v26 = vadd.f32 %v1846_v20, %v1450_v23  ;;  %v1199_v27 = vpop.f32.mrf.mxu0  ;;  %v1452_v28 = vpop.f32.mrf.mxu1  ;;  %v2018_v42 = vmax.f32 %v1954_v25, %v1986_v31 }
 0x1db   : > { %v1453_v34 = vadd.f32 %v1452_v28, %v1199_v27 }
 0x1dc   : > { %v1919_v30 = vmul.f32 %v2911_v21, %v1883_v26 }
 0x1de   : > { %v1955_v33 = vadd.f32 %v2912_v32, %v1919_v30 }
 0x1e0   : > { %v1987_v36 = vmul.f32 0.1, %v1955_v33 }
 0x1e1   : > { %v1849_v37 = vpop.f32.mrf.mxu2  ;;  %v3687_v38 = vpop.f32.mrf.mxu3 }
 0x1e2   : > { %v1884_v40 = vadd.f32 %v1849_v37, %v1453_v34  ;;  %v2019_v7 = vmax.f32 %v1955_v33, %v1987_v36  ;;  %v1201_v44 = vpop.f32.mrf.mxu0  ;;  %v1454_v45 = vpop.f32.mrf.mxu1 }
 0x1e3   : > { %v1455_v35 = vadd.f32 %v1454_v45, %v1201_v44 }
 0x1e4   : > { %v2036_v43 = vpack.c.bf16 %v2019_v7, %v2018_v42  ;;  %v1920_v46 = vmul.f32 %v2911_v21, %v1884_v40 }
 0x1e6   : > { %2180 = vmatmul.bf16.gmra.mxu3 %v2036_v43  ;;  %v1956_v49 = vadd.f32 %v2912_v32, %v1920_v46 }
 0x1e8   : > { %v1988_v53 = vmul.f32 0.1, %v1956_v49 }
 0x1e9   : > { %v1851_v4 = vpop.f32.mrf.mxu2  ;;  %v3689_v47 = vpop.f32.mrf.mxu3 }
 0x1ea   : > { %v1885_v50 = vadd.f32 %v1851_v4, %v1455_v35  ;;  %v2020_v57 = vmax.f32 %v1956_v49, %v1988_v53 }
 0x1ec   : > { %v1921_v52 = vmul.f32 %v2911_v21, %v1885_v50 }
 0x1ee   : > { %v1957_v54 = vadd.f32 %v2912_v32, %v1921_v52 }
 0x1f0   : > { %v1989_v55 = vmul.f32 0.1, %v1957_v54 }
 0x1f1   : > { %v3691_v56 = vpop.f32.mrf.mxu3 }
 0x1f2   : > { %v2021_v59 = vmax.f32 %v1957_v54, %v1989_v55 }
 0x1f4   : > { %v2037_v60 = vpack.c.bf16 %v2021_v59, %v2020_v57 }
 0x1f6   : > { %2185 = vmatmul.bf16.gmra.mxu3 %v2037_v60 }
 0x1f9   : > { %v3693_v61 = vpop.f32.mrf.mxu3 }
 0x201   : > { %v3695_v63 = vpop.f32.mrf.mxu3 }
 0x209   : > { %v3697_v0 = vpop.f32.mrf.mxu3 }
 0x211   : > { %v3699_v1 = vpop.f32.mrf.mxu3 }
 0x219   : > { %v3701_v2 = vpop.f32.mrf.mxu3 }
 0x221   : > { %v3703_v3 = vpop.f32.mrf.mxu3 }
 0x229   : > { %v3705_v5 = vpop.f32.mrf.mxu3 }
 0x231   : > { %v3707_v8 = vpop.f32.mrf.mxu3 }
 0x239   : > { %v3709_v9 = vpop.f32.mrf.mxu3 }
 0x241   : > { %v3711_v10 = vpop.f32.mrf.mxu3 }
 0x249   : > { %v3713_v11 = vpop.f32.mrf.mxu3 }
 0x251   : > { %v3715_v13 = vpop.f32.mrf.mxu3 }
 0x259   : > { %v3717_v14 = vpop.f32.mrf.mxu3 }
 0x261   : > { %v3719_v15 = vpop.f32.mrf.mxu3 }
 0x269   : > { %v3721_v16 = vpop.f32.mrf.mxu3 }
 0x271   : > { %v3723_v18 = vpop.f32.mrf.mxu3 }
 0x279   : > { %v3725_v19 = vpop.f32.mrf.mxu3 }
 0x27d   : > { %2194 = sbr.rel (%p2767_p6) target bundleno = 677 (0x2a5), region = 89 }
 0x281   : > { %v3727_v21 = vpop.f32.mrf.mxu3 }
 0x282   : > { %v2913_v22 = vld [vmem:[%s3953_s5] ss:$0 sm:$0xff] }
 0x283   : > { %v2199_v23 = vadd.f32 %v2913_v22, %v3643_v39  ;;  %v2200_v20 = vadd.f32 %v2913_v22, %v3648_v48  ;;  %v2201_v25 = vadd.f32 %v2913_v22, %v3651_v58  ;;  %v2202_v26 = vadd.f32 %v2913_v22, %v3656_v6 }
 0x284   : > { %v2203_v27 = vadd.f32 %v2913_v22, %v3659_v17  ;;  %v2204_v28 = vadd.f32 %v2913_v22, %v3664_v29  ;;  %v2205_v30 = vadd.f32 %v2913_v22, %v3667_v41  ;;  %v2206_v31 = vadd.f32 %v2913_v22, %v3672_v51 }
 0x285   : > { %2231 = vst [vmem:[%s3730_s20] sm:$0xff] %v2199_v23  ;;  %v2207_v32 = vadd.f32 %v2913_v22, %v3675_v62  ;;  %v2208_v33 = vadd.f32 %v2913_v22, %v3680_v12  ;;  %v2209_v34 = vadd.f32 %v2913_v22, %v3683_v24  ;;  %v2210_v36 = vadd.f32 %v2913_v22, %v3687_v38 }
 0x286   : > { %2232 = vst [vmem:[%s3730_s20 + $0x8] sm:$0xff] %v2200_v20  ;;  %v2211_v37 = vadd.f32 %v2913_v22, %v3689_v47  ;;  %v2212_v40 = vadd.f32 %v2913_v22, %v3691_v56  ;;  %v2213_v42 = vadd.f32 %v2913_v22, %v3693_v61  ;;  %v2214_v7 = vadd.f32 %v2913_v22, %v3695_v63 }
 0x287   : > { %2233 = vst [vmem:[%s3730_s20 + $0x10] sm:$0xff] %v2201_v25  ;;  %v2215_v43 = vadd.f32 %v2913_v22, %v3697_v0  ;;  %v2216_v44 = vadd.f32 %v2913_v22, %v3699_v1  ;;  %v2217_v45 = vadd.f32 %v2913_v22, %v3701_v2  ;;  %v2218_v46 = vadd.f32 %v2913_v22, %v3703_v3 }
 0x288   : > { %2234 = vst [vmem:[%s3730_s20 + $0x18] sm:$0xff] %v2202_v26  ;;  %v2219_v35 = vadd.f32 %v2913_v22, %v3705_v5  ;;  %v2220_v4 = vadd.f32 %v2913_v22, %v3707_v8  ;;  %v2221_v49 = vadd.f32 %v2913_v22, %v3709_v9  ;;  %v2222_v50 = vadd.f32 %v2913_v22, %v3711_v10 }
 0x289   : > { %2235 = vst [vmem:[%s3730_s20 + $0x20] sm:$0xff] %v2203_v27  ;;  %v2223_v52 = vadd.f32 %v2913_v22, %v3713_v11  ;;  %v2224_v53 = vadd.f32 %v2913_v22, %v3715_v13  ;;  %v2225_v54 = vadd.f32 %v2913_v22, %v3717_v14  ;;  %v2226_v55 = vadd.f32 %v2913_v22, %v3719_v15 }
 0x28a   : > { %2236 = vst [vmem:[%s3730_s20 + $0x28] sm:$0xff] %v2204_v28  ;;  %v2227_v57 = vadd.f32 %v2913_v22, %v3721_v16  ;;  %v2228_v59 = vadd.f32 %v2913_v22, %v3723_v18  ;;  %v2229_v60 = vadd.f32 %v2913_v22, %v3725_v19  ;;  %v2230_v23 = vadd.f32 %v2913_v22, %v3727_v21 }
 0x28b   : > { %2237 = vst [vmem:[%s3730_s20 + $0x30] sm:$0xff] %v2205_v30 }
 0x28c   : > { %2238 = vst [vmem:[%s3730_s20 + $0x38] sm:$0xff] %v2206_v31 }
 0x28d   : > { %2239 = vst [vmem:[%s3730_s20 + $0x40] sm:$0xff] %v2207_v32 }
 0x28e   : > { %2240 = vst [vmem:[%s3730_s20 + $0x48] sm:$0xff] %v2208_v33 }
 0x28f   : > { %2241 = vst [vmem:[%s3730_s20 + $0x50] sm:$0xff] %v2209_v34 }
 0x290   : > { %2242 = vst [vmem:[%s3730_s20 + $0x58] sm:$0xff] %v2210_v36 }
 0x291   : > { %2243 = vst [vmem:[%s3730_s20 + $0x60] sm:$0xff] %v2211_v37 }
 0x292   : > { %2244 = vst [vmem:[%s3730_s20 + $0x68] sm:$0xff] %v2212_v40 }
 0x293   : > { %2245 = vst [vmem:[%s3730_s20 + $0x70] sm:$0xff] %v2213_v42 }
 0x294   : > { %2246 = vst [vmem:[%s3730_s20 + $0x78] sm:$0xff] %v2214_v7 }
 0x295   : > { %2247 = vst [vmem:[%s3730_s20 + $0x80] sm:$0xff] %v2215_v43 }
 0x296   : > { %2248 = vst [vmem:[%s3730_s20 + $0x88] sm:$0xff] %v2216_v44 }
 0x297   : > { %2249 = vst [vmem:[%s3730_s20 + $0x90] sm:$0xff] %v2217_v45 }
 0x298   : > { %2250 = vst [vmem:[%s3730_s20 + $0x98] sm:$0xff] %v2218_v46 }
 0x299   : > { %2251 = vst [vmem:[%s3730_s20 + $0xa0] sm:$0xff] %v2219_v35 }
 0x29a   : > { %2252 = vst [vmem:[%s3730_s20 + $0xa8] sm:$0xff] %v2220_v4 }
 0x29b   : > { %2253 = vst [vmem:[%s3730_s20 + $0xb0] sm:$0xff] %v2221_v49 }
 0x29c   : > { %2254 = vst [vmem:[%s3730_s20 + $0xb8] sm:$0xff] %v2222_v50 }
 0x29d   : > { %2255 = vst [vmem:[%s3730_s20 + $0xc0] sm:$0xff] %v2223_v52 }
 0x29e   : > { %2256 = vst [vmem:[%s3730_s20 + $0xc8] sm:$0xff] %v2224_v53 }
 0x29f   : > { %2257 = vst [vmem:[%s3730_s20 + $0xd0] sm:$0xff] %v2225_v54 }
 0x2a0   : > { %2258 = vst [vmem:[%s3730_s20 + $0xd8] sm:$0xff] %v2226_v55 }
 0x2a1   : > { %2259 = vst [vmem:[%s3730_s20 + $0xe0] sm:$0xff] %v2227_v57 }
 0x2a2   : > { %2260 = vst [vmem:[%s3730_s20 + $0xe8] sm:$0xff] %v2228_v59 }
 0x2a3   : > { %2261 = vst [vmem:[%s3730_s20 + $0xf0] sm:$0xff] %v2229_v60 }
 0x2a4   : > { %2262 = vst [vmem:[%s3730_s20 + $0xf8] sm:$0xff] %v2230_v23 }
 0x2a5 PF: > { %p2768_p7 = scmp.eq.s32.totalorder %s3008_s26, 0 }
 0x2a7   : > { %2266 = sbr.rel (%p2768_p7) target bundleno = 719 (0x2cf), region = 93 }
 0x2ac   : > { %v2267_v20 = vld [vmem:[%s3730_s20] sm:$0xff]  ;;  %v2268_v22 = vld [vmem:[%s3730_s20 + $0x8] sm:$0xff]  ;;  %v2269_v25 = vld [vmem:[%s3730_s20 + $0x10] sm:$0xff] }
 0x2ad   : > { %v2299_v26 = vadd.f32 %v2267_v20, %v3643_v39  ;;  %v2300_v27 = vadd.f32 %v2268_v22, %v3648_v48  ;;  %v2301_v28 = vadd.f32 %v2269_v25, %v3651_v58  ;;  %v2270_v30 = vld [vmem:[%s3730_s20 + $0x18] sm:$0xff]  ;;  %v2271_v31 = vld [vmem:[%s3730_s20 + $0x20] sm:$0xff]  ;;  %v2272_v32 = vld [vmem:[%s3730_s20 + $0x28] sm:$0xff] }
 0x2ae   : > { %v2302_v33 = vadd.f32 %v2270_v30, %v3656_v6  ;;  %v2273_v34 = vld [vmem:[%s3730_s20 + $0x30] sm:$0xff]  ;;  %v2303_v36 = vadd.f32 %v2271_v31, %v3659_v17  ;;  %v2274_v39 = vld [vmem:[%s3730_s20 + $0x38] sm:$0xff]  ;;  %v2304_v48 = vadd.f32 %v2272_v32, %v3664_v29  ;;  %v2275_v58 = vld [vmem:[%s3730_s20 + $0x40] sm:$0xff] }
 0x2af   : > { %2331 = vst [vmem:[%s3730_s20] sm:$0xff] %v2299_v26  ;;  %v2305_v37 = vadd.f32 %v2273_v34, %v3667_v41  ;;  %v2276_v6 = vld [vmem:[%s3730_s20 + $0x48] sm:$0xff]  ;;  %v2306_v40 = vadd.f32 %v2274_v39, %v3672_v51  ;;  %v2277_v17 = vld [vmem:[%s3730_s20 + $0x50] sm:$0xff]  ;;  %v2307_v42 = vadd.f32 %v2275_v58, %v3675_v62  ;;  %v2278_v29 = vld [vmem:[%s3730_s20 + $0x58] sm:$0xff] }
 0x2b0   : > { %2332 = vst [vmem:[%s3730_s20 + $0x8] sm:$0xff] %v2300_v27  ;;  %v2308_v7 = vadd.f32 %v2276_v6, %v3680_v12  ;;  %v2279_v41 = vld [vmem:[%s3730_s20 + $0x60] sm:$0xff]  ;;  %v2309_v43 = vadd.f32 %v2277_v17, %v3683_v24  ;;  %v2280_v51 = vld [vmem:[%s3730_s20 + $0x68] sm:$0xff]  ;;  %v2310_v44 = vadd.f32 %v2278_v29, %v3687_v38  ;;  %v2281_v62 = vld [vmem:[%s3730_s20 + $0x70] sm:$0xff] }
 0x2b1   : > { %2333 = vst [vmem:[%s3730_s20 + $0x10] sm:$0xff] %v2301_v28  ;;  %v2311_v45 = vadd.f32 %v2279_v41, %v3689_v47  ;;  %v2282_v12 = vld [vmem:[%s3730_s20 + $0x78] sm:$0xff]  ;;  %v2312_v46 = vadd.f32 %v2280_v51, %v3691_v56  ;;  %v2283_v24 = vld [vmem:[%s3730_s20 + $0x80] sm:$0xff]  ;;  %v2313_v35 = vadd.f32 %v2281_v62, %v3693_v61  ;;  %v2284_v38 = vld [vmem:[%s3730_s20 + $0x88] sm:$0xff] }
 0x2b2   : > { %2334 = vst [vmem:[%s3730_s20 + $0x18] sm:$0xff] %v2302_v33  ;;  %v2314_v4 = vadd.f32 %v2282_v12, %v3695_v63  ;;  %v2285_v47 = vld [vmem:[%s3730_s20 + $0x90] sm:$0xff]  ;;  %v2315_v49 = vadd.f32 %v2283_v24, %v3697_v0  ;;  %v2286_v56 = vld [vmem:[%s3730_s20 + $0x98] sm:$0xff]  ;;  %v2316_v50 = vadd.f32 %v2284_v38, %v3699_v1  ;;  %v2287_v61 = vld [vmem:[%s3730_s20 + $0xa0] sm:$0xff] }
 0x2b3   : > { %2335 = vst [vmem:[%s3730_s20 + $0x20] sm:$0xff] %v2303_v36  ;;  %v2317_v52 = vadd.f32 %v2285_v47, %v3701_v2  ;;  %v2288_v63 = vld [vmem:[%s3730_s20 + $0xa8] sm:$0xff]  ;;  %v2318_v53 = vadd.f32 %v2286_v56, %v3703_v3  ;;  %v2289_v0 = vld [vmem:[%s3730_s20 + $0xb0] sm:$0xff]  ;;  %v2319_v54 = vadd.f32 %v2287_v61, %v3705_v5  ;;  %v2290_v1 = vld [vmem:[%s3730_s20 + $0xb8] sm:$0xff] }
 0x2b4   : > { %2336 = vst [vmem:[%s3730_s20 + $0x28] sm:$0xff] %v2304_v48  ;;  %v2320_v55 = vadd.f32 %v2288_v63, %v3707_v8  ;;  %v2291_v2 = vld [vmem:[%s3730_s20 + $0xc0] sm:$0xff]  ;;  %v2321_v57 = vadd.f32 %v2289_v0, %v3709_v9  ;;  %v2292_v3 = vld [vmem:[%s3730_s20 + $0xc8] sm:$0xff]  ;;  %v2322_v59 = vadd.f32 %v2290_v1, %v3711_v10  ;;  %v2293_v5 = vld [vmem:[%s3730_s20 + $0xd0] sm:$0xff] }
 0x2b5   : > { %2337 = vst [vmem:[%s3730_s20 + $0x30] sm:$0xff] %v2305_v37  ;;  %v2323_v60 = vadd.f32 %v2291_v2, %v3713_v11  ;;  %v2294_v8 = vld [vmem:[%s3730_s20 + $0xd8] sm:$0xff]  ;;  %v2324_v23 = vadd.f32 %v2292_v3, %v3715_v13  ;;  %v2295_v20 = vld [vmem:[%s3730_s20 + $0xe0] sm:$0xff]  ;;  %v2325_v9 = vadd.f32 %v2293_v5, %v3717_v14  ;;  %v2296_v10 = vld [vmem:[%s3730_s20 + $0xe8] sm:$0xff] }
 0x2b6   : > { %2338 = vst [vmem:[%s3730_s20 + $0x38] sm:$0xff] %v2306_v40  ;;  %v2326_v22 = vadd.f32 %v2294_v8, %v3719_v15  ;;  %v2297_v25 = vld [vmem:[%s3730_s20 + $0xf0] sm:$0xff]  ;;  %v2327_v11 = vadd.f32 %v2295_v20, %v3721_v16  ;;  %v2298_v26 = vld [vmem:[%s3730_s20 + $0xf8] sm:$0xff]  ;;  %v2328_v13 = vadd.f32 %v2296_v10, %v3723_v18 }
 0x2b7   : > { %2339 = vst [vmem:[%s3730_s20 + $0x40] sm:$0xff] %v2307_v42  ;;  %v2329_v27 = vadd.f32 %v2297_v25, %v3725_v19  ;;  %v2330_v14 = vadd.f32 %v2298_v26, %v3727_v21 }
 0x2b8   : > { %2340 = vst [vmem:[%s3730_s20 + $0x48] sm:$0xff] %v2308_v7 }
 0x2b9   : > { %2341 = vst [vmem:[%s3730_s20 + $0x50] sm:$0xff] %v2309_v43 }
 0x2ba   : > { %2342 = vst [vmem:[%s3730_s20 + $0x58] sm:$0xff] %v2310_v44 }
 0x2bb   : > { %2343 = vst [vmem:[%s3730_s20 + $0x60] sm:$0xff] %v2311_v45 }
 0x2bc   : > { %2344 = vst [vmem:[%s3730_s20 + $0x68] sm:$0xff] %v2312_v46 }
 0x2bd   : > { %2345 = vst [vmem:[%s3730_s20 + $0x70] sm:$0xff] %v2313_v35 }
 0x2be   : > { %2346 = vst [vmem:[%s3730_s20 + $0x78] sm:$0xff] %v2314_v4 }
 0x2bf   : > { %2347 = vst [vmem:[%s3730_s20 + $0x80] sm:$0xff] %v2315_v49 }
 0x2c0   : > { %2348 = vst [vmem:[%s3730_s20 + $0x88] sm:$0xff] %v2316_v50 }
 0x2c1   : > { %2349 = vst [vmem:[%s3730_s20 + $0x90] sm:$0xff] %v2317_v52 }
 0x2c2   : > { %2350 = vst [vmem:[%s3730_s20 + $0x98] sm:$0xff] %v2318_v53 }
 0x2c3   : > { %2351 = vst [vmem:[%s3730_s20 + $0xa0] sm:$0xff] %v2319_v54 }
 0x2c4   : > { %2352 = vst [vmem:[%s3730_s20 + $0xa8] sm:$0xff] %v2320_v55 }
 0x2c5   : > { %2353 = vst [vmem:[%s3730_s20 + $0xb0] sm:$0xff] %v2321_v57 }
 0x2c6   : > { %2354 = vst [vmem:[%s3730_s20 + $0xb8] sm:$0xff] %v2322_v59 }
 0x2c7   : > { %2355 = vst [vmem:[%s3730_s20 + $0xc0] sm:$0xff] %v2323_v60 }
 0x2c8   : > { %2356 = vst [vmem:[%s3730_s20 + $0xc8] sm:$0xff] %v2324_v23 }
 0x2c9   : > { %2357 = vst [vmem:[%s3730_s20 + $0xd0] sm:$0xff] %v2325_v9 }
 0x2ca   : > { %2358 = vst [vmem:[%s3730_s20 + $0xd8] sm:$0xff] %v2326_v22 }
 0x2cb   : > { %2359 = vst [vmem:[%s3730_s20 + $0xe0] sm:$0xff] %v2327_v11 }
 0x2cc   : > { %2360 = vst [vmem:[%s3730_s20 + $0xe8] sm:$0xff] %v2328_v13 }
 0x2cd   : > { %2361 = vst [vmem:[%s3730_s20 + $0xf0] sm:$0xff] %v2329_v27 }
 0x2ce   : > { %2362 = vst [vmem:[%s3730_s20 + $0xf8] sm:$0xff] %v2330_v14 }
 0x2cf PF: > { %s2816_s26 = sshll.u32 %s3012_s27, 8  ;;  %s2376_s16 = sshll.u32 %s3730_s20, 4  ;;  %s2377_s16 = int_to_ptr.vmem [resolvable:$true] %s2376_s16 }
 0x2d0   : > { %s2375_s12 = scalar_lea.hbm %s3954_s6, %s2816_s26  ;;  %s3971_s13 = sand.u32 1, %s2992_s22  }
 0x2d1   : > { %s2378_s8 = sshll.u32 %s2375_s12, 4  ;;  %s2364_s14 = scalar_lea.sflag [#allocation4], %s3971_s13  ;;  %s2379_s8 = int_to_ptr.hbm [resolvable:$true] %s2378_s8 }
 0x2d2   : > { %s2928_s24 = sshra.s32 %s2379_s8, 4  ;;  %s2934_s27 = scalar_lea.hbm %s3954_s6, 512  ;;  %s2929_s24 = int_to_ptr.hbm [resolvable:$true] %s2928_s24 }
 0x2d3   : > { %s2930_s0 = scalar_lea.hbm %s2929_s24, 256  ;;  %p2935_p13 = scmp.lt.s32.totalorder %s2929_s24, %s3954_s6 }
 0x2d4   : > { %p2931_p8 = scmp.ne.s32.totalorder %s2929_s24, %s2930_s0  ;;  %p2936_p0 = scmp.lt.s32.totalorder %s2934_s27, %s2930_s0 }
 0x2d6   : > { %p2932_p9 = pnand %p2931_p8, %p3142_p10  ;;  %p2937_p1 = por %p2936_p0, %p2935_p13 }
 0x2d8   : > { %p2933_p11 = pneg %p2932_p9 }
 0x2da   : > { %p2938_p2 = pnand %p2937_p1, %p2933_p11 }
 0x2dc   : > { %2941 = shalt.err (!%p2938_p2)
}
 0x2dd   : > { %s3026_s20 = smov 128   ;;  %s3027_s26 = smov 8  }
 0x2de   : > { %2820 = dma.vmem_to_hbm [thread:$0]  (%p3142_p10), %s2377_s16, 4096, %s2379_s8, %s2364_s14, %s3026_s20, %s3026_s20, %s3027_s26  }
 0x2df PF: > { %p2826_p3 = scmp.ge.s32.totalorder %s3024_s30, 2  ;;  %s2393_s1 = sand.u32 1, %s2988_s21  }
 0x2e0   : > { %s2394_s2 = scalar_lea.sflag [#allocation4], %s2393_s1 }
 0x2e1   : > { %p2823_p4 = pnand %p2826_p3, %p3149_p12 }
 0x2e3   : > { %p2824_p5 = pneg %p2823_p4 }
 0x2e5   : > { %2983 = dma.done.wait (%p2824_p5), %s2394_s2, 4096  }
 0x2e6   : > { %2985 = vsyncadd (%p2824_p5), %s2394_s2, 4294963200  ;;  %s19_s30 = sadd.s32 1, %s3024_s30   ;;  %s3972_s21 = smov %s2992_s22 }
 0x2e7   : > { %p16_p6 = scmp.ge.s32.totalorder %s19_s30, 6   ;;  %s3973_s22 = smov %s2996_s23 }
 0x2e8   : > { %s3974_s23 = smov %s3147_s18  ;;  %s3975_s24 = smov %s3004_s25 }
 0x2e9   : > { %s3976_s25 = smov %s3136_s15  ;;  %s3977_s26 = smov %s3016_s28 }
 0x2ea   : > { %s3978_s27 = smov %s3020_s29  ;;  %s3979_s28 = smov %s3982_s9 }
 0x2eb   : > { %s3980_s29 = smov %s3986_s10  ;;  %18 = sbr.rel (!%p16_p6) target bundleno = 11 (0xb), region = 147 }
 0x2f0   :  { %2400 = vsyncpa [#allocation4], 1 }
 0x2f1   :  { %2402 = vsyncpa [#allocation4 + $0x1], 1 }

</bundles_post_ra>
